<compile_context>
chip_gen: v5e
topology: v5e:2x2
jax: 0.10.0
libtpu: 0.0.40
codegen_flags: <defaults>
</compile_context>

<pallas_src>
import functools

import jax
import jax.numpy as jnp
from jax.experimental import pallas as pl
from jax.experimental.pallas import tpu as pltpu


N_IN = 28 * 28        # 784
N_HID = 512
N_OUT = 10
N_OUT_PAD = 128       # lane-dense padded output width


def mlp_kernel(x_ref, w1_ref, b1_ref, w2_ref, b2_ref, w3_ref, b3_ref, o_ref):
    # Layer 1: (TB, 784)bf16 @ (784, 512)bf16 -> f32, +bias, ReLU
    h1 = jnp.dot(x_ref[...], w1_ref[...], preferred_element_type=jnp.float32)
    h1 = jnp.maximum(h1 + b1_ref[...], 0.0)
    # Layer 2: (TB, 512)bf16 @ (512, 512)bf16 -> f32, +bias, ReLU
    h2 = jnp.dot(h1.astype(jnp.bfloat16), w2_ref[...],
                 preferred_element_type=jnp.float32)
    h2 = jnp.maximum(h2 + b2_ref[...], 0.0)
    # Layer 3: (TB, 512)bf16 @ (512, 128)bf16 -> f32, +bias
    # (output columns 10..127 are padding; sliced off in the wrapper)
    logits = jnp.dot(h2.astype(jnp.bfloat16), w3_ref[...],
                     preferred_element_type=jnp.float32)
    o_ref[...] = logits + b3_ref[...]


@functools.partial(jax.jit, static_argnames=("tile_b",))
def mlp_forward(x_nchw, w1, b1, w2, b2, w3, b3, *, tile_b=512):
    B = x_nchw.shape[0]
    # nn.Flatten(): (B, 1, 28, 28) -> (B, 784), row-major (C, H, W order)
    x = x_nchw.reshape(B, -1)

    # Batch tile: multiple of 8 (sublane), capped so double-buffered x/out
    # tiles stay small next to the VMEM-resident weights.
    TB = min(tile_b, max(8, ((B + 7) // 8) * 8))
    Bp = pl.cdiv(B, TB) * TB
    if Bp != B:
        x = jnp.pad(x, ((0, Bp - B), (0, 0)))

    # bf16 inputs to the MXU; biases stay f32 (f32 VPU bias-add/ReLU).
    x_bf = x.astype(jnp.bfloat16)
    w1_bf = w1.astype(jnp.bfloat16)
    w2_bf = w2.astype(jnp.bfloat16)
    # Pad layer-3 weights/bias to 128 output lanes (lane-dense stores).
    w3_bf = jnp.pad(w3, ((0, 0), (0, N_OUT_PAD - N_OUT))).astype(jnp.bfloat16)
    b3_p = jnp.pad(b3, ((0, 0), (0, N_OUT_PAD - N_OUT)))

    # Weights/biases: same (0, 0) block every grid step -> fetched once,
    # VMEM-resident across the batch loop.
    resident = lambda shape: pl.BlockSpec(shape, lambda i: (0, 0))

    out = pl.pallas_call(
        mlp_kernel,
        out_shape=jax.ShapeDtypeStruct((Bp, N_OUT_PAD), jnp.float32),
        grid=(Bp // TB,),
        in_specs=[
            pl.BlockSpec((TB, N_IN), lambda i: (i, 0)),               # x tile
            resident((N_IN, N_HID)), resident((1, N_HID)),            # w1, b1
            resident((N_HID, N_HID)), resident((1, N_HID)),           # w2, b2
            resident((N_HID, N_OUT_PAD)), resident((1, N_OUT_PAD)),   # w3, b3
        ],
        out_specs=pl.BlockSpec((TB, N_OUT_PAD), lambda i: (i, 0)),
        compiler_params=pltpu.CompilerParams(
            dimension_semantics=("parallel",),
        ),
    )(x_bf, w1_bf, b1, w2_bf, b2, w3_bf, b3_p)

    return out[:B, :N_OUT]


def init_linear(key, fan_in, fan_out):
    # PyTorch nn.Linear default init: U(-1/sqrt(fan_in), 1/sqrt(fan_in))
    kw, kb = jax.random.split(key)
    bound = 1.0 / jnp.sqrt(fan_in)
    # Stored as (in, out) so the kernel does x @ W (== x @ W_torch.T).
    w = jax.random.uniform(kw, (fan_in, fan_out), jnp.float32, -bound, bound)
    b = jax.random.uniform(kb, (1, fan_out), jnp.float32, -bound, bound)
    return w, b


if __name__ == "__main__":
    key = jax.random.PRNGKey(0)
    kx, k1, k2, k3 = jax.random.split(key, 4)

    B = 8
    x = jax.random.normal(kx, (B, 1, 28, 28), jnp.float32)  # NCHW like PyTorch

    w1, b1 = init_linear(k1, N_IN, N_HID)
    w2, b2 = init_linear(k2, N_HID, N_HID)
    w3, b3 = init_linear(k3, N_HID, N_OUT)

    logits = mlp_forward(x, w1, b1, w2, b2, w3, b3)
    jax.block_until_ready(logits)

    # Reference in plain JAX using the same bf16 weight quantization + f32 acc.
    xf = x.reshape(B, -1).astype(jnp.bfloat16)
    r1 = jnp.maximum(
        jnp.dot(xf, w1.astype(jnp.bfloat16),
                preferred_element_type=jnp.float32) + b1, 0.0)
    r2 = jnp.maximum(
        jnp.dot(r1.astype(jnp.bfloat16), w2.astype(jnp.bfloat16),
                preferred_element_type=jnp.float32) + b2, 0.0)
    ref = jnp.dot(r2.astype(jnp.bfloat16), w3.astype(jnp.bfloat16),
                  preferred_element_type=jnp.float32) + b3

    assert logits.shape == (B, N_OUT)
    assert jnp.allclose(logits, ref, atol=1e-2, rtol=1e-2)

    print("KERNEL_OK")
</pallas_src>

<mosaic_0001>
module attributes {stable_mosaic.version = 11 : i64} {
  func.func @mlp_kernel(%arg0: i32, %arg1: memref<8x784xbf16, #tpu.memory_space<vmem>>, %arg2: memref<784x512xbf16, #tpu.memory_space<vmem>>, %arg3: memref<1x512xf32, #tpu.memory_space<vmem>>, %arg4: memref<512x512xbf16, #tpu.memory_space<vmem>>, %arg5: memref<1x512xf32, #tpu.memory_space<vmem>>, %arg6: memref<512x128xbf16, #tpu.memory_space<vmem>>, %arg7: memref<1x128xf32, #tpu.memory_space<vmem>>, %arg8: memref<8x128xf32, #tpu.memory_space<vmem>>) attributes {dimension_semantics = [#tpu.dimension_semantics<parallel>], iteration_bounds = array<i64: 1>, scalar_prefetch = 0 : i64, scratch_operands = 0 : i64, tpu.core_type = #tpu.core_type<tc>, window_params = [{transform_indices = @transform_0, window_bounds = array<i64: 8, 784>}, {pipeline_mode = #tpu.pipeline_mode<synchronous>, transform_indices = @transform_1, window_bounds = array<i64: 784, 512>}, {pipeline_mode = #tpu.pipeline_mode<synchronous>, transform_indices = @transform_2, window_bounds = array<i64: 1, 512>}, {pipeline_mode = #tpu.pipeline_mode<synchronous>, transform_indices = @transform_3, window_bounds = array<i64: 512, 512>}, {pipeline_mode = #tpu.pipeline_mode<synchronous>, transform_indices = @transform_4, window_bounds = array<i64: 1, 512>}, {pipeline_mode = #tpu.pipeline_mode<synchronous>, transform_indices = @transform_5, window_bounds = array<i64: 512, 128>}, {pipeline_mode = #tpu.pipeline_mode<synchronous>, transform_indices = @transform_6, window_bounds = array<i64: 1, 128>}, {transform_indices = @transform_7, window_bounds = array<i64: 8, 128>}]} {
    %c0 = arith.constant 0 : index
    %c0_0 = arith.constant 0 : index
    %0 = vector.load %arg1[%c0, %c0_0] : memref<8x784xbf16, #tpu.memory_space<vmem>>, vector<8x784xbf16>
    %c0_1 = arith.constant 0 : index
    %c0_2 = arith.constant 0 : index
    %1 = vector.load %arg2[%c0_1, %c0_2] : memref<784x512xbf16, #tpu.memory_space<vmem>>, vector<784x512xbf16>
    %cst = arith.constant dense<0.000000e+00> : vector<8x512xf32>
    %2 = tpu.matmul %0, %1, %cst {dimension_numbers = #tpu.dot_dimension_numbers<[1], [0], [0], [1], [0, 0, 1, 1], [], []>} : vector<8x784xbf16>, vector<784x512xbf16>, vector<8x512xf32> -> vector<8x512xf32>
    %c0_3 = arith.constant 0 : index
    %c0_4 = arith.constant 0 : index
    %3 = vector.load %arg3[%c0_3, %c0_4] : memref<1x512xf32, #tpu.memory_space<vmem>>, vector<1x512xf32>
    %4 = vector.broadcast %3 : vector<1x512xf32> to vector<8x512xf32>
    %5 = arith.addf %2, %4 : vector<8x512xf32>
    %cst_5 = arith.constant 0.000000e+00 : f32
    %6 = vector.broadcast %cst_5 : f32 to vector<8x512xf32>
    %7 = arith.maximumf %5, %6 : vector<8x512xf32>
    %8 = arith.truncf %7 : vector<8x512xf32> to vector<8x512xbf16>
    %c0_6 = arith.constant 0 : index
    %c0_7 = arith.constant 0 : index
    %9 = vector.load %arg4[%c0_6, %c0_7] : memref<512x512xbf16, #tpu.memory_space<vmem>>, vector<512x512xbf16>
    %cst_8 = arith.constant dense<0.000000e+00> : vector<8x512xf32>
    %10 = tpu.matmul %8, %9, %cst_8 {dimension_numbers = #tpu.dot_dimension_numbers<[1], [0], [0], [1], [0, 0, 1, 1], [], []>} : vector<8x512xbf16>, vector<512x512xbf16>, vector<8x512xf32> -> vector<8x512xf32>
    %c0_9 = arith.constant 0 : index
    %c0_10 = arith.constant 0 : index
    %11 = vector.load %arg5[%c0_9, %c0_10] : memref<1x512xf32, #tpu.memory_space<vmem>>, vector<1x512xf32>
    %12 = vector.broadcast %11 : vector<1x512xf32> to vector<8x512xf32>
    %13 = arith.addf %10, %12 : vector<8x512xf32>
    %cst_11 = arith.constant 0.000000e+00 : f32
    %14 = vector.broadcast %cst_11 : f32 to vector<8x512xf32>
    %15 = arith.maximumf %13, %14 : vector<8x512xf32>
    %16 = arith.truncf %15 : vector<8x512xf32> to vector<8x512xbf16>
    %c0_12 = arith.constant 0 : index
    %c0_13 = arith.constant 0 : index
    %17 = vector.load %arg6[%c0_12, %c0_13] : memref<512x128xbf16, #tpu.memory_space<vmem>>, vector<512x128xbf16>
    %cst_14 = arith.constant dense<0.000000e+00> : vector<8x128xf32>
    %18 = tpu.matmul %16, %17, %cst_14 {dimension_numbers = #tpu.dot_dimension_numbers<[1], [0], [0], [1], [0, 0, 1, 1], [], []>} : vector<8x512xbf16>, vector<512x128xbf16>, vector<8x128xf32> -> vector<8x128xf32>
    %c0_15 = arith.constant 0 : index
    %c0_16 = arith.constant 0 : index
    %19 = vector.load %arg7[%c0_15, %c0_16] : memref<1x128xf32, #tpu.memory_space<vmem>>, vector<1x128xf32>
    %20 = vector.broadcast %19 : vector<1x128xf32> to vector<8x128xf32>
    %21 = arith.addf %18, %20 : vector<8x128xf32>
    %c0_17 = arith.constant 0 : index
    %c0_18 = arith.constant 0 : index
    %22 = vector.load %arg8[%c0_17, %c0_18] : memref<8x128xf32, #tpu.memory_space<vmem>>, vector<8x128xf32>
    tpu.vector_store %arg8[%c0_17, %c0_18], %21 {strides = array<i32>} : memref<8x128xf32, #tpu.memory_space<vmem>>, vector<8x128xf32>,
    return
  }
  func.func @transform_0(%arg0: i32) -> (i32, i32) {
    %c0_i32 = arith.constant 0 : i32
    %c0_i32_0 = arith.constant 0 : i32
    return %arg0, %c0_i32 : i32, i32
  }
  func.func @transform_1(%arg0: i32) -> (i32, i32) {
    %c0_i32 = arith.constant 0 : i32
    %c0_i32_0 = arith.constant 0 : i32
    %c0_i32_1 = arith.constant 0 : i32
    return %c0_i32, %c0_i32_0 : i32, i32
  }
  func.func @transform_2(%arg0: i32) -> (i32, i32) {
    %c0_i32 = arith.constant 0 : i32
    %c0_i32_0 = arith.constant 0 : i32
    %c0_i32_1 = arith.constant 0 : i32
    return %c0_i32, %c0_i32_0 : i32, i32
  }
  func.func @transform_3(%arg0: i32) -> (i32, i32) {
    %c0_i32 = arith.constant 0 : i32
    %c0_i32_0 = arith.constant 0 : i32
    %c0_i32_1 = arith.constant 0 : i32
    return %c0_i32, %c0_i32_0 : i32, i32
  }
  func.func @transform_4(%arg0: i32) -> (i32, i32) {
    %c0_i32 = arith.constant 0 : i32
    %c0_i32_0 = arith.constant 0 : i32
    %c0_i32_1 = arith.constant 0 : i32
    return %c0_i32, %c0_i32_0 : i32, i32
  }
  func.func @transform_5(%arg0: i32) -> (i32, i32) {
    %c0_i32 = arith.constant 0 : i32
    %c0_i32_0 = arith.constant 0 : i32
    %c0_i32_1 = arith.constant 0 : i32
    return %c0_i32, %c0_i32_0 : i32, i32
  }
  func.func @transform_6(%arg0: i32) -> (i32, i32) {
    %c0_i32 = arith.constant 0 : i32
    %c0_i32_0 = arith.constant 0 : i32
    %c0_i32_1 = arith.constant 0 : i32
    return %c0_i32, %c0_i32_0 : i32, i32
  }
  func.func @transform_7(%arg0: i32) -> (i32, i32) {
    %c0_i32 = arith.constant 0 : i32
    %c0_i32_0 = arith.constant 0 : i32
    return %arg0, %c0_i32 : i32, i32
  }
}

</mosaic_0001>

<bundles_post_ra>
// kernel: mlp_forward.1
= control target key start
LH: loop header
LB: loop body
LE: loop exit
PB: predicated region body
PF: predicated region fallthrough
CT: control target
= control target key end

     0   :  { %vm1242_vm0 = vcmask 130048   ;;  %s6991_s0 = inlined_call_operand.vmem [shape: bf16[8,784], index: 0, kind: input, shape index: {}]   ;;  %s6992_s1 = inlined_call_operand.vmem [shape: bf16[784,512], index: 1, kind: input, shape index: {}]   ;;  %s6993_s2 = inlined_call_operand.vmem [shape: f32[1,512], index: 2, kind: input, shape index: {}]   ;;  %s6994_s3 = inlined_call_operand.vmem [shape: bf16[512,512], index: 3, kind: input, shape index: {}]   ;;  %s6995_s4 = inlined_call_operand.vmem [shape: f32[1,512], index: 4, kind: input, shape index: {}]   ;;  %s6996_s5 = inlined_call_operand.vmem [shape: bf16[512,128], index: 5, kind: input, shape index: {}]   ;;  %s6997_s6 = inlined_call_operand.vmem [shape: f32[1,128], index: 6, kind: input, shape index: {}]   ;;  %s6998_s7 = inlined_call_operand.hbm [shape: f32[8,128], index: 7, kind: output, shape index: {}]  }
   0x1   :  { %v3055_v0 = vld [vmem:[%s6992_s1 + $0xe0] sm:$0xf]  ;;  %v4399_v1 = vld [vmem:[%s6992_s1 + $0xec] sm:$0xf0] }
   0x2   :  { %v3183_v2 = vld [vmem:[%s6992_s1 + $0x1e0] sm:$0xf]  ;;  %v3056_v3 = vor.u32 %v4399_v1, %v3055_v0  ;;  %v4431_v4 = vld [vmem:[%s6992_s1 + $0x1ec] sm:$0xf0] }
   0x3   :  { %v3311_v5 = vld [vmem:[%s6992_s1 + $0x2e0] sm:$0xf]  ;;  %v4463_v6 = vld [vmem:[%s6992_s1 + $0x2ec] sm:$0xf0]  ;;  %v3184_v7 = vor.u32 %v4431_v4, %v3183_v2 }
   0x4   :  { %v3312_v8 = vor.u32 %v4463_v6, %v3311_v5  ;;  %v3439_v9 = vld [vmem:[%s6992_s1 + $0x3e0] sm:$0xf]  ;;  %v4495_v10 = vld [vmem:[%s6992_s1 + $0x3ec] sm:$0xf0]  ;;  %1246 = vmatpush.bf16.msra.mxu0 %v3056_v3 }
   0x5   :  { %v3039_v11 = vld [vmem:[%s6992_s1 + $0xc0] sm:$0xf]  ;;  %v3440_v12 = vor.u32 %v4495_v10, %v3439_v9  ;;  %v4395_v13 = vld [vmem:[%s6992_s1 + $0xcc] sm:$0xf0]  ;;  %1259 = vmatpush.bf16.msra.mxu1 %v3184_v7 }
   0x6   :  { %v3167_v14 = vld [vmem:[%s6992_s1 + $0x1c0] sm:$0xf]  ;;  %v4427_v15 = vld [vmem:[%s6992_s1 + $0x1cc] sm:$0xf0]  ;;  %1272 = vmatpush.bf16.msra.mxu2 %v3312_v8  ;;  %v3040_v16 = vor.u32 %v4395_v13, %v3039_v11 }
   0x7   :  { %v3168_v17 = vor.u32 %v4427_v15, %v3167_v14  ;;  %v3295_v18 = vld [vmem:[%s6992_s1 + $0x2c0] sm:$0xf]  ;;  %v4459_v19 = vld [vmem:[%s6992_s1 + $0x2cc] sm:$0xf0]  ;;  %1285 = vmatpush.bf16.msra.mxu3 %v3440_v12 }
   0x8   :  { %v3423_v20 = vld [vmem:[%s6992_s1 + $0x3c0] sm:$0xf]  ;;  %v3296_v21 = vor.u32 %v4459_v19, %v3295_v18  ;;  %v4491_v22 = vld [vmem:[%s6992_s1 + $0x3cc] sm:$0xf0]  ;;  %1247 = vmatpush.bf16.msra.mxu0 %v3040_v16 }
   0x9   :  { %v3023_v23 = vld [vmem:[%s6992_s1 + $0xa0] sm:$0xf]  ;;  %v4391_v24 = vld [vmem:[%s6992_s1 + $0xac] sm:$0xf0]  ;;  %v3424_v25 = vor.u32 %v4491_v22, %v3423_v20  ;;  %1260 = vmatpush.bf16.msra.mxu1 %v3168_v17 }
   0xa   :  { %v3151_v26 = vld [vmem:[%s6992_s1 + $0x1a0] sm:$0xf]  ;;  %v4423_v27 = vld [vmem:[%s6992_s1 + $0x1ac] sm:$0xf0]  ;;  %v3024_v29 = vor.u32 %v4391_v24, %v3023_v23  ;;  %1273 = vmatpush.bf16.msra.mxu2 %v3296_v21 }
   0xb   :  { %v3279_v28 = vld [vmem:[%s6992_s1 + $0x2a0] sm:$0xf]  ;;  %v4455_v30 = vld [vmem:[%s6992_s1 + $0x2ac] sm:$0xf0]  ;;  %v3152_v33 = vor.u32 %v4423_v27, %v3151_v26  ;;  %1286 = vmatpush.bf16.msra.mxu3 %v3424_v25  ;;  %v29_v25 = vld [vmem:[%s6991_s0 + $0x8] sm:$0xff] }
   0xc   :  { %v3407_v31 = vld [vmem:[%s6992_s1 + $0x3a0] sm:$0xf]  ;;  %v4487_v32 = vld [vmem:[%s6992_s1 + $0x3ac] sm:$0xf0]  ;;  %v3280_v34 = vor.u32 %v4455_v30, %v3279_v28  ;;  %1248 = vmatpush.bf16.msra.mxu0 %v3024_v29 }
   0xd   :  { %v3007_v35 = vld [vmem:[%s6992_s1 + $0x80] sm:$0xf]  ;;  %v4387_v36 = vld [vmem:[%s6992_s1 + $0x8c] sm:$0xf0]  ;;  %v3408_v38 = vor.u32 %v4487_v32, %v3407_v31  ;;  %1261 = vmatpush.bf16.msra.mxu1 %v3152_v33 }
   0xe   :  { %v3135_v37 = vld [vmem:[%s6992_s1 + $0x180] sm:$0xf]  ;;  %v4419_v39 = vld [vmem:[%s6992_s1 + $0x18c] sm:$0xf0]  ;;  %v3008_v44 = vor.u32 %v4387_v36, %v3007_v35  ;;  %1274 = vmatpush.bf16.msra.mxu2 %v3280_v34  ;;  %v4397_v34 = vld [vmem:[%s6992_s1 + $0xe4] sm:$0xf]  ;;  %v244_v36 = vunpack.c.l.b16 %v29_v25 }
   0xf   :  { %v3263_v40 = vld [vmem:[%s6992_s1 + $0x280] sm:$0xf]  ;;  %v4451_v41 = vld [vmem:[%s6992_s1 + $0x28c] sm:$0xf0]  ;;  %v3136_v45 = vor.u32 %v4419_v39, %v3135_v37  ;;  %1287 = vmatpush.bf16.msra.mxu3 %v3408_v38  ;;  %v3057_v35 = vld [vmem:[%s6992_s1 + $0xf0] sm:$0xf0] }
  0x10   :  { %v3391_v42 = vld [vmem:[%s6992_s1 + $0x380] sm:$0xf]  ;;  %v4483_v43 = vld [vmem:[%s6992_s1 + $0x38c] sm:$0xf0]  ;;  %v3264_v46 = vor.u32 %v4451_v41, %v3263_v40  ;;  %1249 = vmatpush.bf16.msra.mxu0 %v3008_v44 }
  0x11   :  { %v2991_v47 = vld [vmem:[%s6992_s1 + $0x60] sm:$0xf]  ;;  %v4383_v48 = vld [vmem:[%s6992_s1 + $0x6c] sm:$0xf0]  ;;  %v3392_v50 = vor.u32 %v4483_v43, %v3391_v42  ;;  %1262 = vmatpush.bf16.msra.mxu1 %v3136_v45  ;;  %v245_v42 = vunpack.c.h.b16 %v29_v25  ;;  %v4417_v25 = vld [vmem:[%s6992_s1 + $0x184] sm:$0xf] }
  0x12   :  { %v3119_v49 = vld [vmem:[%s6992_s1 + $0x160] sm:$0xf]  ;;  %v4415_v51 = vld [vmem:[%s6992_s1 + $0x16c] sm:$0xf0]  ;;  %v2992_v56 = vor.u32 %v4383_v48, %v2991_v47  ;;  %1275 = vmatpush.bf16.msra.mxu2 %v3264_v46  ;;  %v4429_v46 = vld [vmem:[%s6992_s1 + $0x1e4] sm:$0xf] }
  0x13   :  { %v3247_v52 = vld [vmem:[%s6992_s1 + $0x260] sm:$0xf]  ;;  %v4447_v53 = vld [vmem:[%s6992_s1 + $0x26c] sm:$0xf0]  ;;  %v3120_v57 = vor.u32 %v4415_v51, %v3119_v49  ;;  %1288 = vmatpush.bf16.msra.mxu3 %v3392_v50  ;;  %v3185_v47 = vld [vmem:[%s6992_s1 + $0x1f0] sm:$0xf0]  ;;  %v3060_v49 = vor.u32 %v4397_v34, %v3057_v35 }
  0x14   :  { %v3375_v54 = vld [vmem:[%s6992_s1 + $0x360] sm:$0xf]  ;;  %v4479_v55 = vld [vmem:[%s6992_s1 + $0x36c] sm:$0xf0]  ;;  %v3248_v58 = vor.u32 %v4447_v53, %v3247_v52  ;;  %1250 = vmatpush.bf16.msra.mxu0 %v2992_v56  ;;  %v5031_v53 = vpack.c.b16 %v244_v36, %v244_v36  ;;  %v3041_v56 = vld [vmem:[%s6992_s1 + $0xd0] sm:$0xf0] }
  0x15   :  { %v2975_v59 = vld [vmem:[%s6992_s1 + $0x40] sm:$0xf]  ;;  %v4379_v60 = vld [vmem:[%s6992_s1 + $0x4c] sm:$0xf0]  ;;  %v3376_v62 = vor.u32 %v4479_v55, %v3375_v54  ;;  %1263 = vmatpush.bf16.msra.mxu1 %v3120_v57  ;;  %v4393_v55 = vld [vmem:[%s6992_s1 + $0xc4] sm:$0xf] }
  0x16   :  { %v3103_v61 = vld [vmem:[%s6992_s1 + $0x140] sm:$0xf]  ;;  %v4411_v63 = vld [vmem:[%s6992_s1 + $0x14c] sm:$0xf0]  ;;  %v2976_v4 = vor.u32 %v4379_v60, %v2975_v59  ;;  %1276 = vmatpush.bf16.msra.mxu2 %v3248_v58  ;;  %v5044_v60 = vpack.c.b16 %v245_v42, %v245_v42  ;;  %v2993_v34 = vld [vmem:[%s6992_s1 + $0x70] sm:$0xf0] }
  0x17   :  { %v3231_v0 = vld [vmem:[%s6992_s1 + $0x240] sm:$0xf]  ;;  %v4443_v1 = vld [vmem:[%s6992_s1 + $0x24c] sm:$0xf0]  ;;  %v3104_v5 = vor.u32 %v4411_v63, %v3103_v61  ;;  %1289 = vmatpush.bf16.msra.mxu3 %v3376_v62  ;;  %v3188_v61 = vor.u32 %v4429_v46, %v3185_v47  ;;  %v4425_v63 = vld [vmem:[%s6992_s1 + $0x1c4] sm:$0xf] }
  0x18   :  { %v3359_v2 = vld [vmem:[%s6992_s1 + $0x340] sm:$0xf]  ;;  %v4475_v3 = vld [vmem:[%s6992_s1 + $0x34c] sm:$0xf0]  ;;  %v3232_v6 = vor.u32 %v4443_v1, %v3231_v0  ;;  %1251 = vmatpush.bf16.msra.mxu0 %v2976_v4  ;;  %v3169_v0 = vld [vmem:[%s6992_s1 + $0x1d0] sm:$0xf0] }
  0x19   :  { %v2959_v7 = vld [vmem:[%s6992_s1 + $0x20] sm:$0xf]  ;;  %v4375_v8 = vld [vmem:[%s6992_s1 + $0x2c] sm:$0xf0]  ;;  %v3360_v10 = vor.u32 %v4475_v3, %v3359_v2  ;;  %1264 = vmatpush.bf16.msra.mxu1 %v3104_v5  ;;  %v3044_v2 = vor.u32 %v4393_v55, %v3041_v56  ;;  %v4377_v46 = vld [vmem:[%s6992_s1 + $0x44] sm:$0xf] }
  0x1a   :  { %v3087_v9 = vld [vmem:[%s6992_s1 + $0x120] sm:$0xf]  ;;  %v4407_v11 = vld [vmem:[%s6992_s1 + $0x12c] sm:$0xf0]  ;;  %v2960_v17 = vor.u32 %v4375_v8, %v2959_v7  ;;  %1277 = vmatpush.bf16.msra.mxu2 %v3232_v6  ;;  %v4389_v7 = vld [vmem:[%s6992_s1 + $0xa4] sm:$0xf] }
  0x1b   :  { %v3215_v12 = vld [vmem:[%s6992_s1 + $0x220] sm:$0xf]  ;;  %v4439_v13 = vld [vmem:[%s6992_s1 + $0x22c] sm:$0xf0]  ;;  %v3088_v21 = vor.u32 %v4407_v11, %v3087_v9  ;;  %1290 = vmatpush.bf16.msra.mxu3 %v3360_v10  ;;  %v3025_v8 = vld [vmem:[%s6992_s1 + $0xb0] sm:$0xf0]  ;;  %v3172_v10 = vor.u32 %v4425_v63, %v3169_v0 }
  0x1c   :  { %v3343_v14 = vld [vmem:[%s6992_s1 + $0x320] sm:$0xf]  ;;  %v4471_v15 = vld [vmem:[%s6992_s1 + $0x32c] sm:$0xf0]  ;;  %v3216_v22 = vor.u32 %v4439_v13, %v3215_v12  ;;  %1252 = vmatpush.bf16.msra.mxu0 %v2960_v17  ;;  %v4421_v12 = vld [vmem:[%s6992_s1 + $0x1a4] sm:$0xf] }
  0x1d   :  { %v2943_v16 = vld [vmem:[%s6992_s1] sm:$0xf]  ;;  %v4371_v18 = vld [vmem:[%s6992_s1 + $0xc] sm:$0xf0]  ;;  %v3344_v26 = vor.u32 %v4471_v15, %v3343_v14  ;;  %1265 = vmatpush.bf16.msra.mxu1 %v3088_v21  ;;  %v3153_v13 = vld [vmem:[%s6992_s1 + $0x1b0] sm:$0xf0]  ;;  %v3028_v15 = vor.u32 %v4389_v7, %v3025_v8 }
  0x1e   :  { %v3071_v19 = vld [vmem:[%s6992_s1 + $0x100] sm:$0xf]  ;;  %v4403_v20 = vld [vmem:[%s6992_s1 + $0x10c] sm:$0xf0]  ;;  %v2944_v33 = vor.u32 %v4371_v18, %v2943_v16  ;;  %1278 = vmatpush.bf16.msra.mxu2 %v3216_v22  ;;  %v3009_v21 = vld [vmem:[%s6992_s1 + $0x90] sm:$0xf0] }
  0x1f   :  { %v3199_v23 = vld [vmem:[%s6992_s1 + $0x200] sm:$0xf]  ;;  %v4435_v24 = vld [vmem:[%s6992_s1 + $0x20c] sm:$0xf0]  ;;  %v3072_v38 = vor.u32 %v4403_v20, %v3071_v19  ;;  %1291 = vmatpush.bf16.msra.mxu3 %v3344_v26  ;;  %v4385_v20 = vld [vmem:[%s6992_s1 + $0x84] sm:$0xf] }
  0x20   :  { %v3327_v27 = vld [vmem:[%s6992_s1 + $0x300] sm:$0xf]  ;;  %v4467_v28 = vld [vmem:[%s6992_s1 + $0x30c] sm:$0xf0]  ;;  %v3200_v39 = vor.u32 %v4435_v24, %v3199_v23  ;;  %1253 = vmatpush.bf16.msra.mxu0 %v2944_v33  ;;  %v31_v22 = vld [vmem:[%s6991_s0 + $0x18] sm:$0xf]  ;;  %v3156_v23 = vor.u32 %v4421_v12, %v3153_v13 }
  0x21   :  { %v3567_v29 = vld [vmem:[%s6992_s1 + $0x4e0] sm:$0xf]  ;;  %v4527_v30 = vld [vmem:[%s6992_s1 + $0x4ec] sm:$0xf0]  ;;  %v3328_v43 = vor.u32 %v4467_v28, %v3327_v27  ;;  %1266 = vmatpush.bf16.msra.mxu1 %v3072_v38  ;;  %v3137_v26 = vld [vmem:[%s6992_s1 + $0x190] sm:$0xf0]  ;;  %v3012_v28 = vor.u32 %v4385_v20, %v3009_v21  ;;  %v248_v35 = vunpack.c.l.b16 %v31_v22 }
  0x22   :  { %v3695_v31 = vld [vmem:[%s6992_s1 + $0x5e0] sm:$0xf]  ;;  %v4559_v32 = vld [vmem:[%s6992_s1 + $0x5ec] sm:$0xf0]  ;;  %v3568_v44 = vor.u32 %v4527_v30, %v3567_v29  ;;  %1279 = vmatpush.bf16.msra.mxu2 %v3200_v39  ;;  %v4381_v33 = vld [vmem:[%s6992_s1 + $0x64] sm:$0xf]  ;;  %v3140_v36 = vor.u32 %v4417_v25, %v3137_v26 }
  0x23   :  { %v28_v37 = vld [vmem:[%s6991_s0] sm:$0xff]  ;;  %v4563_v45 = vld [vmem:[%s6992_s1 + $0x60c] sm:$0xf0]  ;;  %v3696_v48 = vor.u32 %v4559_v32, %v3695_v31  ;;  %1292 = vmatpush.bf16.msra.mxu3 %v3328_v43  ;;  %v3121_v39 = vld [vmem:[%s6992_s1 + $0x170] sm:$0xf0] }
  0x24   :  { %v3711_v40 = vld [vmem:[%s6992_s1 + $0x600] sm:$0xf]  ;;  %v242_v41 = vunpack.c.l.b16 %v28_v37  ;;  %v4523_v51 = vld [vmem:[%s6992_s1 + $0x4cc] sm:$0xf0]  ;;  %v243_v58 = vunpack.c.h.b16 %v28_v37  ;;  %1298 = vmatpush.bf16.msrb.mxu0 %v3568_v44  ;;  %v4413_v38 = vld [vmem:[%s6992_s1 + $0x164] sm:$0xf] }
  0x25   :  { %v3551_v50 = vld [vmem:[%s6992_s1 + $0x4c0] sm:$0xf]  ;;  %v4555_v54 = vld [vmem:[%s6992_s1 + $0x5cc] sm:$0xf0]  ;;  %v3712_v59 = vor.u32 %v4563_v45, %v3711_v40  ;;  %1311 = vmatpush.bf16.msrb.mxu1 %v3696_v48  ;;  %1280 = vmatmul.bf16.vlgmr.msra.gmra.mxu2 %v5031_v53  ;;  %v2977_v47 = vld [vmem:[%s6992_s1 + $0x50] sm:$0xf0]  ;;  %v5151_v48 = vpack.c.b16 %v248_v35, %v248_v35 }
  0x26   :  { %v3679_v52 = vld [vmem:[%s6992_s1 + $0x5c0] sm:$0xf]  ;;  %v5042_v57 = vpack.c.b16 %v242_v41, %v242_v41  ;;  %v3552_v62 = vor.u32 %v4523_v51, %v3551_v50  ;;  %v4519_v4 = vld [vmem:[%s6992_s1 + $0x4ac] sm:$0xf0]  ;;  %v5072_v9 = vpack.c.b16 %v243_v58, %v243_v58  ;;  %1293 = vmatmul.bf16.vlgmr.msra.gmra.mxu3 %v5044_v60  ;;  %v2996_v41 = vor.u32 %v4381_v33, %v2993_v34  ;;  %v4409_v51 = vld [vmem:[%s6992_s1 + $0x144] sm:$0xf] }
  0x27   :  { %1337 = vmatpush.bf16.msrb.mxu3 %v3060_v49  ;;  %v3680_v1 = vor.u32 %v4555_v54, %v3679_v52  ;;  %v3535_v3 = vld [vmem:[%s6992_s1 + $0x4a0] sm:$0xf]  ;;  %v4551_v6 = vld [vmem:[%s6992_s1 + $0x5ac] sm:$0xf0]  ;;  %1331 = vmatpush.bf16.msrb.mxu2 %v3712_v59  ;;  %v3124_v49 = vor.u32 %v4413_v38, %v3121_v39  ;;  %v3105_v52 = vld [vmem:[%s6992_s1 + $0x150] sm:$0xf0]  ;;  %v2980_v55 = vor.u32 %v4377_v46, %v2977_v47 }
  0x28   :  { %v3663_v5 = vld [vmem:[%s6992_s1 + $0x5a0] sm:$0xf]  ;;  %1254 = vmatmul.bf16.vlgmr.msra.gmra.mxu0 %v5042_v57  ;;  %v3536_v11 = vor.u32 %v4519_v4, %v3535_v3  ;;  %v4515_v17 = vld [vmem:[%s6992_s1 + $0x48c] sm:$0xf0]  ;;  %1267 = vmatmul.bf16.vlgmr.msra.gmra.mxu1 %v5072_v9  ;;  %v2961_v63 = vld [vmem:[%s6992_s1 + $0x30] sm:$0xf0] }
  0x29   :  { %1299 = vmatpush.bf16.msrb.mxu0 %v3552_v62  ;;  %1312 = vmatpush.bf16.msrb.mxu1 %v3680_v1  ;;  %v3664_v14 = vor.u32 %v4551_v6, %v3663_v5  ;;  %v3519_v16 = vld [vmem:[%s6992_s1 + $0x480] sm:$0xf]  ;;  %v4547_v19 = vld [vmem:[%s6992_s1 + $0x58c] sm:$0xf0]  ;;  %v4373_v62 = vld [vmem:[%s6992_s1 + $0x24] sm:$0xf]  ;;  %v3108_v1 = vor.u32 %v4409_v51, %v3105_v52 }
  0x2a   :  { %v3647_v18 = vld [vmem:[%s6992_s1 + $0x580] sm:$0xf]  ;;  %v3520_v24 = vor.u32 %v4515_v17, %v3519_v16  ;;  %v4511_v30 = vld [vmem:[%s6992_s1 + $0x46c] sm:$0xf0]  ;;  %v4405_v0 = vld [vmem:[%s6992_s1 + $0x124] sm:$0xf]  ;;  %v2964_v7 = vor.u32 %v4373_v62, %v2961_v63 }
  0x2b   :  { %1350 = vmatpush.bf16.msra.mxu2 %v3188_v61  ;;  %1338 = vmatpush.bf16.msrb.mxu3 %v3044_v2  ;;  %v3648_v27 = vor.u32 %v4547_v19, %v3647_v18  ;;  %v3503_v29 = vld [vmem:[%s6992_s1 + $0x460] sm:$0xf]  ;;  %v4543_v32 = vld [vmem:[%s6992_s1 + $0x56c] sm:$0xf0]  ;;  %v3089_v3 = vld [vmem:[%s6992_s1 + $0x130] sm:$0xf0] }
  0x2c   :  { %v3631_v31 = vld [vmem:[%s6992_s1 + $0x560] sm:$0xf]  ;;  %v3504_v37 = vor.u32 %v4511_v30, %v3503_v29  ;;  %v4507_v43 = vld [vmem:[%s6992_s1 + $0x44c] sm:$0xf0]  ;;  %v4369_v12 = vld [vmem:[%s6992_s1 + $0x4] sm:$0xf]  ;;  %v3092_v19 = vor.u32 %v4405_v0, %v3089_v3 }
  0x2d   :  { %1300 = vmatpush.bf16.msrb.mxu0 %v3536_v11  ;;  %1313 = vmatpush.bf16.msrb.mxu1 %v3664_v14  ;;  %v3632_v40 = vor.u32 %v4543_v32, %v3631_v31  ;;  %v3487_v42 = vld [vmem:[%s6992_s1 + $0x440] sm:$0xf]  ;;  %v4539_v45 = vld [vmem:[%s6992_s1 + $0x54c] sm:$0xf0]  ;;  %v2945_v13 = vld [vmem:[%s6992_s1 + $0x10] sm:$0xf0] }
  0x2e   :  { %v3615_v44 = vld [vmem:[%s6992_s1 + $0x540] sm:$0xf]  ;;  %v3488_v50 = vor.u32 %v4507_v43, %v3487_v42  ;;  %v4503_v58 = vld [vmem:[%s6992_s1 + $0x42c] sm:$0xf0]  ;;  %v4461_v14 = vld [vmem:[%s6992_s1 + $0x2e4] sm:$0xf]  ;;  %v2948_v25 = vor.u32 %v4369_v12, %v2945_v13 }
  0x2f   :  { %1351 = vmatpush.bf16.msra.mxu2 %v3172_v10  ;;  %1339 = vmatpush.bf16.msrb.mxu3 %v3028_v15  ;;  %v3616_v54 = vor.u32 %v4539_v45, %v3615_v44  ;;  %v3471_v56 = vld [vmem:[%s6992_s1 + $0x420] sm:$0xf]  ;;  %v4535_v61 = vld [vmem:[%s6992_s1 + $0x52c] sm:$0xf0]  ;;  %v3313_v15 = vld [vmem:[%s6992_s1 + $0x2f0] sm:$0xf0] }
  0x30   :  { %v3599_v59 = vld [vmem:[%s6992_s1 + $0x520] sm:$0xf]  ;;  %v3472_v2 = vor.u32 %v4503_v58, %v3471_v56  ;;  %v30_v5 = vld [vmem:[%s6991_s0 + $0x10] sm:$0xff]  ;;  %v4493_v16 = vld [vmem:[%s6992_s1 + $0x3e4] sm:$0xf] }
  0x31   :  { %1301 = vmatpush.bf16.msrb.mxu0 %v3520_v24  ;;  %1314 = vmatpush.bf16.msrb.mxu1 %v3648_v27  ;;  %v3455_v4 = vld [vmem:[%s6992_s1 + $0x400] sm:$0xf]  ;;  %v3600_v6 = vor.u32 %v4535_v61, %v3599_v59  ;;  %v4499_v8 = vld [vmem:[%s6992_s1 + $0x40c] sm:$0xf0]  ;;  %v3441_v17 = vld [vmem:[%s6992_s1 + $0x3f0] sm:$0xf0]  ;;  %v246_v18 = vunpack.c.l.b16 %v30_v5 }
  0x32   :  { %v3583_v10 = vld [vmem:[%s6992_s1 + $0x500] sm:$0xf]  ;;  %v4531_v11 = vld [vmem:[%s6992_s1 + $0x50c] sm:$0xf0]  ;;  %v3456_v20 = vor.u32 %v4499_v8, %v3455_v4  ;;  %v4525_v21 = vld [vmem:[%s6992_s1 + $0x4e4] sm:$0xf]  ;;  %v3444_v29 = vor.u32 %v4493_v16, %v3441_v17 }
  0x33   :  { %1352 = vmatpush.bf16.msra.mxu2 %v3156_v23  ;;  %1340 = vmatpush.bf16.msrb.mxu3 %v3012_v28  ;;  %v3569_v22 = vld [vmem:[%s6992_s1 + $0x4f0] sm:$0xf0]  ;;  %v247_v23 = vunpack.c.h.b16 %v30_v5  ;;  %v3584_v24 = vor.u32 %v4531_v11, %v3583_v10  ;;  %v4401_v26 = vld [vmem:[%s6992_s1 + $0x104] sm:$0xf]  ;;  %v3316_v28 = vor.u32 %v4461_v14, %v3313_v15  ;;  %v5239_v34 = vpack.c.b16 %v246_v18, %v246_v18 }
  0x34   :  { %v3073_v27 = vld [vmem:[%s6992_s1 + $0x110] sm:$0xf0]  ;;  %v4557_v30 = vld [vmem:[%s6992_s1 + $0x5e4] sm:$0xf]  ;;  %v3572_v33 = vor.u32 %v4525_v21, %v3569_v22 }
  0x35   :  { %1302 = vmatpush.bf16.msrb.mxu0 %v3504_v37  ;;  %1315 = vmatpush.bf16.msrb.mxu1 %v3632_v40  ;;  %v3697_v31 = vld [vmem:[%s6992_s1 + $0x5f0] sm:$0xf0]  ;;  %v4457_v32 = vld [vmem:[%s6992_s1 + $0x2c4] sm:$0xf]  ;;  %v3076_v38 = vor.u32 %v4401_v26, %v3073_v27  ;;  %v5250_v39 = vpack.c.b16 %v247_v23, %v247_v23 }
  0x36   :  { %3725 = vmatmul.msk.bf16.vlgmr.msrb.gmra.mxu2 %vm1242_vm0, %v5151_v48  ;;  %v3297_v35 = vld [vmem:[%s6992_s1 + $0x2d0] sm:$0xf0]  ;;  %v4521_v40 = vld [vmem:[%s6992_s1 + $0x4c4] sm:$0xf]  ;;  %v3700_v42 = vor.u32 %v4557_v30, %v3697_v31 }
  0x37   :  { %1353 = vmatpush.bf16.msra.mxu2 %v3140_v36  ;;  %1341 = vmatpush.bf16.msrb.mxu3 %v2996_v41  ;;  %v4489_v36 = vld [vmem:[%s6992_s1 + $0x3c4] sm:$0xf]  ;;  %v3425_v37 = vld [vmem:[%s6992_s1 + $0x3d0] sm:$0xf0]  ;;  %v3300_v43 = vor.u32 %v4457_v32, %v3297_v35 }
  0x38   :  { %v3553_v41 = vld [vmem:[%s6992_s1 + $0x4d0] sm:$0xf0]  ;;  %v3428_v44 = vor.u32 %v4489_v36, %v3425_v37  ;;  %v4553_v45 = vld [vmem:[%s6992_s1 + $0x5c4] sm:$0xf] }
  0x39   :  { %1303 = vmatpush.bf16.msrb.mxu0 %v3488_v50  ;;  %1316 = vmatpush.bf16.msrb.mxu1 %v3616_v54  ;;  %v3681_v46 = vld [vmem:[%s6992_s1 + $0x5d0] sm:$0xf0]  ;;  %v4453_v47 = vld [vmem:[%s6992_s1 + $0x2a4] sm:$0xf] }
  0x3a   :  { %v3281_v50 = vld [vmem:[%s6992_s1 + $0x2b0] sm:$0xf0]  ;;  %v4485_v51 = vld [vmem:[%s6992_s1 + $0x3a4] sm:$0xf]  ;;  %v3684_v56 = vor.u32 %v4553_v45, %v3681_v46 }
  0x3b   :  { %1354 = vmatpush.bf16.msra.mxu2 %v3124_v49  ;;  %1342 = vmatpush.bf16.msrb.mxu3 %v2980_v55  ;;  %v3556_v49 = vor.u32 %v4521_v40, %v3553_v41  ;;  %v3409_v52 = vld [vmem:[%s6992_s1 + $0x3b0] sm:$0xf0]  ;;  %v4517_v54 = vld [vmem:[%s6992_s1 + $0x4a4] sm:$0xf]  ;;  %v3284_v58 = vor.u32 %v4453_v47, %v3281_v50 }
  0x3c   :  { %v3537_v55 = vld [vmem:[%s6992_s1 + $0x4b0] sm:$0xf0]  ;;  %v3412_v59 = vor.u32 %v4485_v51, %v3409_v52  ;;  %v4549_v61 = vld [vmem:[%s6992_s1 + $0x5a4] sm:$0xf] }
  0x3d   :  { %1304 = vmatpush.bf16.msrb.mxu0 %v3472_v2  ;;  %1317 = vmatpush.bf16.msrb.mxu1 %v3600_v6  ;;  %v3665_v62 = vld [vmem:[%s6992_s1 + $0x5b0] sm:$0xf0]  ;;  %v4449_v63 = vld [vmem:[%s6992_s1 + $0x284] sm:$0xf]  ;;  %v3540_v0 = vor.u32 %v4517_v54, %v3537_v55 }
  0x3e   :  { %v4481_v2 = vld [vmem:[%s6992_s1 + $0x384] sm:$0xf]  ;;  %v3393_v3 = vld [vmem:[%s6992_s1 + $0x390] sm:$0xf0]  ;;  %v3668_v6 = vor.u32 %v4549_v61, %v3665_v62 }
  0x3f   :  { %1355 = vmatpush.bf16.msra.mxu2 %v3108_v1  ;;  %1343 = vmatpush.bf16.msrb.mxu3 %v2964_v7  ;;  %v3265_v1 = vld [vmem:[%s6992_s1 + $0x290] sm:$0xf0]  ;;  %v4513_v4 = vld [vmem:[%s6992_s1 + $0x484] sm:$0xf]  ;;  %v3396_v8 = vor.u32 %v4481_v2, %v3393_v3 }
  0x40   :  { %v3521_v5 = vld [vmem:[%s6992_s1 + $0x490] sm:$0xf0]  ;;  %v3268_v7 = vor.u32 %v4449_v63, %v3265_v1  ;;  %v4545_v10 = vld [vmem:[%s6992_s1 + $0x584] sm:$0xf] }
  0x41   :  { %1305 = vmatpush.bf16.msrb.mxu0 %v3456_v20  ;;  %1318 = vmatpush.bf16.msrb.mxu1 %v3584_v24  ;;  %v3649_v11 = vld [vmem:[%s6992_s1 + $0x590] sm:$0xf0]  ;;  %v4445_v12 = vld [vmem:[%s6992_s1 + $0x264] sm:$0xf]  ;;  %v3524_v13 = vor.u32 %v4513_v4, %v3521_v5 }
  0x42   :  { %v3249_v14 = vld [vmem:[%s6992_s1 + $0x270] sm:$0xf0]  ;;  %v4477_v15 = vld [vmem:[%s6992_s1 + $0x364] sm:$0xf] }
  0x43   :  { %1356 = vmatpush.bf16.msra.mxu2 %v3092_v19  ;;  %1344 = vmatpush.bf16.msrb.mxu3 %v2948_v25  ;;  %v3377_v16 = vld [vmem:[%s6992_s1 + $0x370] sm:$0xf0]  ;;  %v4509_v17 = vld [vmem:[%s6992_s1 + $0x464] sm:$0xf]  ;;  %v3652_v19 = vor.u32 %v4545_v10, %v3649_v11  ;;  %v3252_v20 = vor.u32 %v4445_v12, %v3249_v14 }
  0x44   :  { %1306 = vmatmul.bf16.vlgmr.msrb.gmra.mxu0 %v5239_v34  ;;  %1319 = vmatmul.bf16.vlgmr.msrb.gmra.mxu1 %v5250_v39  ;;  %v3505_v18 = vld [vmem:[%s6992_s1 + $0x470] sm:$0xf0]  ;;  %v3380_v21 = vor.u32 %v4477_v15, %v3377_v16  ;;  %v4541_v22 = vld [vmem:[%s6992_s1 + $0x564] sm:$0xf] }
  0x45   :  { %1363 = vmatpush.bf16.msra.mxu0 %v3316_v28  ;;  %1376 = vmatpush.bf16.msra.mxu1 %v3444_v29  ;;  %v3633_v23 = vld [vmem:[%s6992_s1 + $0x570] sm:$0xf0]  ;;  %v4441_v24 = vld [vmem:[%s6992_s1 + $0x244] sm:$0xf]  ;;  %v3508_v25 = vor.u32 %v4509_v17, %v3505_v18 }
  0x46   :  { %1345 = vmatmul.bf16.vlgmr.msrb.gmra.mxu3 %v5042_v57  ;;  %v3233_v26 = vld [vmem:[%s6992_s1 + $0x250] sm:$0xf0]  ;;  %v4473_v27 = vld [vmem:[%s6992_s1 + $0x344] sm:$0xf]  ;;  %v3636_v31 = vor.u32 %v4541_v22, %v3633_v23 }
  0x47   :  { %1389 = vmatpush.bf16.msra.mxu3 %v3572_v33  ;;  %1357 = vmatpush.bf16.msra.mxu2 %v3076_v38  ;;  %v3361_v28 = vld [vmem:[%s6992_s1 + $0x350] sm:$0xf0]  ;;  %v4505_v29 = vld [vmem:[%s6992_s1 + $0x444] sm:$0xf]  ;;  %v3236_v33 = vor.u32 %v4441_v24, %v3233_v26 }
  0x48   :  { %v3489_v30 = vld [vmem:[%s6992_s1 + $0x450] sm:$0xf0]  ;;  %v4537_v32 = vld [vmem:[%s6992_s1 + $0x544] sm:$0xf]  ;;  %v3364_v35 = vor.u32 %v4473_v27, %v3361_v28 }
  0x49   :  { %1364 = vmatpush.bf16.msra.mxu0 %v3300_v43  ;;  %1377 = vmatpush.bf16.msra.mxu1 %v3428_v44  ;;  %v3617_v36 = vld [vmem:[%s6992_s1 + $0x550] sm:$0xf0]  ;;  %v4437_v37 = vld [vmem:[%s6992_s1 + $0x224] sm:$0xf]  ;;  %v3492_v40 = vor.u32 %v4505_v29, %v3489_v30 }
  0x4a   :  { %1358 = vmatmul.bf16.vlgmr.msra.gmra.mxu2 %v5072_v9  ;;  %v3217_v38 = vld [vmem:[%s6992_s1 + $0x230] sm:$0xf0]  ;;  %v4469_v41 = vld [vmem:[%s6992_s1 + $0x324] sm:$0xf]  ;;  %v3620_v45 = vor.u32 %v4537_v32, %v3617_v36 }
  0x4b   :  { %1402 = vmatpush.bf16.msrb.mxu2 %v3700_v42  ;;  %1390 = vmatpush.bf16.msra.mxu3 %v3556_v49  ;;  %v3345_v42 = vld [vmem:[%s6992_s1 + $0x330] sm:$0xf0]  ;;  %v4501_v43 = vld [vmem:[%s6992_s1 + $0x424] sm:$0xf]  ;;  %v3220_v50 = vor.u32 %v4437_v37, %v3217_v38 }
  0x4c   :  { %v3473_v44 = vld [vmem:[%s6992_s1 + $0x430] sm:$0xf0]  ;;  %v4533_v46 = vld [vmem:[%s6992_s1 + $0x524] sm:$0xf]  ;;  %v3348_v51 = vor.u32 %v4469_v41, %v3345_v42 }
  0x4d   :  { %1365 = vmatpush.bf16.msra.mxu0 %v3284_v58  ;;  %1378 = vmatpush.bf16.msra.mxu1 %v3412_v59  ;;  %v3601_v47 = vld [vmem:[%s6992_s1 + $0x530] sm:$0xf0]  ;;  %v4433_v49 = vld [vmem:[%s6992_s1 + $0x204] sm:$0xf] }
  0x4e   :  { %v3201_v52 = vld [vmem:[%s6992_s1 + $0x210] sm:$0xf0]  ;;  %v4465_v54 = vld [vmem:[%s6992_s1 + $0x304] sm:$0xf] }
  0x4f   :  { %1403 = vmatpush.bf16.msrb.mxu2 %v3684_v56  ;;  %1391 = vmatpush.bf16.msra.mxu3 %v3540_v0 }
  0x51   :  { %1366 = vmatpush.bf16.msra.mxu0 %v3268_v7  ;;  %1379 = vmatpush.bf16.msra.mxu1 %v3396_v8 }
  0x53   :  { %1404 = vmatpush.bf16.msrb.mxu2 %v3668_v6  ;;  %1392 = vmatpush.bf16.msra.mxu3 %v3524_v13 }
  0x55   :  { %1367 = vmatpush.bf16.msra.mxu0 %v3252_v20  ;;  %1380 = vmatpush.bf16.msra.mxu1 %v3380_v21 }
  0x57   :  { %1405 = vmatpush.bf16.msrb.mxu2 %v3652_v19  ;;  %1393 = vmatpush.bf16.msra.mxu3 %v3508_v25 }
  0x59   :  { %1368 = vmatpush.bf16.msra.mxu0 %v3236_v33  ;;  %1381 = vmatpush.bf16.msra.mxu1 %v3364_v35 }
  0x5b   :  { %1406 = vmatpush.bf16.msrb.mxu2 %v3636_v31 }
  0x5c   :  { %12 = vsyncpa [#allocation3], 0  ;;  %1394 = vmatpush.bf16.msra.mxu3 %v3492_v40  ;;  %v3476_v55 = vor.u32 %v4501_v43, %v3473_v44  ;;  %v3329_v56 = vld [vmem:[%s6992_s1 + $0x310] sm:$0xf0]  ;;  %v4497_v58 = vld [vmem:[%s6992_s1 + $0x404] sm:$0xf]  ;;  %v3604_v0 = vor.u32 %v4533_v46, %v3601_v47  ;;  %v3204_v4 = vor.u32 %v4433_v49, %v3201_v52 }
  0x5d   :  { %v3457_v59 = vld [vmem:[%s6992_s1 + $0x410] sm:$0xf0]  ;;  %v3063_v61 = vld [vmem:[%s6992_s1 + $0xe8] sm:$0xf]  ;;  %v4400_v62 = vld [vmem:[%s6992_s1 + $0xf4] sm:$0xf0]  ;;  %1369 = vmatpush.bf16.msra.mxu0 %v3220_v50  ;;  %1382 = vmatpush.bf16.msra.mxu1 %v3348_v51  ;;  %v3332_v5 = vor.u32 %v4465_v54, %v3329_v56 }
  0x5e   :  { %v4561_v63 = vld [vmem:[%s6992_s1 + $0x604] sm:$0xf]  ;;  %v3713_v1 = vld [vmem:[%s6992_s1 + $0x610] sm:$0xf0]  ;;  %v3319_v2 = vld [vmem:[%s6992_s1 + $0x2e8] sm:$0xf]  ;;  %v3460_v8 = vor.u32 %v4497_v58, %v3457_v59  ;;  %v3064_v10 = vor.u32 %v4400_v62, %v3063_v61 }
  0x5f   :  { %1407 = vmatpush.bf16.msrb.mxu2 %v3620_v45  ;;  %v4464_v3 = vld [vmem:[%s6992_s1 + $0x2f4] sm:$0xf0]  ;;  %v4529_v6 = vld [vmem:[%s6992_s1 + $0x504] sm:$0xf]  ;;  %v3585_v7 = vld [vmem:[%s6992_s1 + $0x510] sm:$0xf0]  ;;  %v3716_v13 = vor.u32 %v4561_v63, %v3713_v1 }
  0x60   :  { %1395 = vmatpush.bf16.msra.mxu3 %v3476_v55  ;;  %v3447_v11 = vld [vmem:[%s6992_s1 + $0x3e8] sm:$0xf]  ;;  %v4496_v12 = vld [vmem:[%s6992_s1 + $0x3f4] sm:$0xf0]  ;;  %v3320_v16 = vor.u32 %v4464_v3, %v3319_v2  ;;  %v3588_v17 = vor.u32 %v4529_v6, %v3585_v7  ;;  %s4753_s13 = smov [#allocation2]   ;;  %s2932_s17 = sshll.u32 %s6998_s7, 4  ;;  %s2933_s17 = int_to_ptr.hbm [resolvable:$true] %s2932_s17 }
  0x61   :  { %v3191_v14 = vld [vmem:[%s6992_s1 + $0x1e8] sm:$0xf]  ;;  %v4432_v15 = vld [vmem:[%s6992_s1 + $0x1f4] sm:$0xf0]  ;;  %1370 = vmatpush.bf16.msra.mxu0 %v3204_v4  ;;  %1383 = vmatpush.bf16.msra.mxu1 %v3332_v5  ;;  %v3448_v20 = vor.u32 %v4496_v12, %v3447_v11  ;;  %s2930_s14 = sshll.u32 %s4753_s13, 4  ;;  %s2931_s14 = int_to_ptr.vmem [resolvable:$true] %s2930_s14 }
  0x62   :  { %v3047_v18 = vld [vmem:[%s6992_s1 + $0xc8] sm:$0xf]  ;;  %v4396_v19 = vld [vmem:[%s6992_s1 + $0xd4] sm:$0xf0]  ;;  %v3192_v23 = vor.u32 %v4432_v15, %v3191_v14 }
  0x63   :  { %1408 = vmatpush.bf16.msrb.mxu2 %v3604_v0  ;;  %v3303_v21 = vld [vmem:[%s6992_s1 + $0x2c8] sm:$0xf]  ;;  %v4460_v22 = vld [vmem:[%s6992_s1 + $0x2d4] sm:$0xf0]  ;;  %v3048_v26 = vor.u32 %v4396_v19, %v3047_v18 }
  0x64   :  { %1396 = vmatpush.bf16.msra.mxu3 %v3460_v8  ;;  %v3431_v24 = vld [vmem:[%s6992_s1 + $0x3c8] sm:$0xf]  ;;  %v4492_v25 = vld [vmem:[%s6992_s1 + $0x3d4] sm:$0xf0]  ;;  %1371 = vmatmul.bf16.vlgmr.msra.gmra.mxu0 %v5031_v53  ;;  %v3304_v29 = vor.u32 %v4460_v22, %v3303_v21 }
  0x65   :  { %1428 = vmatpush.bf16.msrb.mxu1 %v3064_v10  ;;  %1454 = vmatpush.bf16.msrb.mxu0 %v3320_v16  ;;  %v3175_v27 = vld [vmem:[%s6992_s1 + $0x1c8] sm:$0xf]  ;;  %v4428_v28 = vld [vmem:[%s6992_s1 + $0x1d4] sm:$0xf0]  ;;  %v3432_v32 = vor.u32 %v4492_v25, %v3431_v24 }
  0x66   :  { %v3031_v30 = vld [vmem:[%s6992_s1 + $0xa8] sm:$0xf]  ;;  %v4392_v31 = vld [vmem:[%s6992_s1 + $0xb4] sm:$0xf0]  ;;  %1384 = vmatmul.bf16.vlgmr.msra.gmra.mxu1 %v5044_v60  ;;  %v3176_v36 = vor.u32 %v4428_v28, %v3175_v27 }
  0x67   :  { %1409 = vmatpush.bf16.msrb.mxu2 %v3588_v17  ;;  %1397 = vmatmul.bf16.vlgmr.msra.gmra.mxu3 %v5239_v34  ;;  %v3287_v33 = vld [vmem:[%s6992_s1 + $0x2a8] sm:$0xf]  ;;  %v4456_v35 = vld [vmem:[%s6992_s1 + $0x2b4] sm:$0xf0]  ;;  %v3032_v40 = vor.u32 %v4392_v31, %v3031_v30 }
  0x68   :  { %1422 = vmatpush.bf16.msrb.mxu3 %v3716_v13  ;;  %v3415_v37 = vld [vmem:[%s6992_s1 + $0x3a8] sm:$0xf]  ;;  %v4488_v38 = vld [vmem:[%s6992_s1 + $0x3b4] sm:$0xf0]  ;;  %v3288_v43 = vor.u32 %v4456_v35, %v3287_v33 }
  0x69   :  { %1429 = vmatpush.bf16.msrb.mxu1 %v3048_v26  ;;  %v3159_v41 = vld [vmem:[%s6992_s1 + $0x1a8] sm:$0xf]  ;;  %v4424_v42 = vld [vmem:[%s6992_s1 + $0x1b4] sm:$0xf0]  ;;  %1455 = vmatpush.bf16.msrb.mxu0 %v3304_v29  ;;  %v3416_v46 = vor.u32 %v4488_v38, %v3415_v37 }
  0x6a   :  { %1410 = vmatmul.bf16.vlgmr.msrb.gmra.mxu2 %v5250_v39  ;;  %v3015_v44 = vld [vmem:[%s6992_s1 + $0x88] sm:$0xf]  ;;  %v4388_v45 = vld [vmem:[%s6992_s1 + $0x94] sm:$0xf0]  ;;  %v3160_v50 = vor.u32 %v4424_v42, %v3159_v41 }
  0x6b   :  { %1467 = vmatpush.bf16.msra.mxu2 %v3448_v20  ;;  %v3271_v47 = vld [vmem:[%s6992_s1 + $0x288] sm:$0xf]  ;;  %v4452_v49 = vld [vmem:[%s6992_s1 + $0x294] sm:$0xf0]  ;;  %v3016_v54 = vor.u32 %v4388_v45, %v3015_v44 }
  0x6c   :  { %1441 = vmatpush.bf16.msra.mxu3 %v3192_v23  ;;  %v3399_v51 = vld [vmem:[%s6992_s1 + $0x388] sm:$0xf]  ;;  %v4484_v52 = vld [vmem:[%s6992_s1 + $0x394] sm:$0xf0]  ;;  %v3272_v58 = vor.u32 %v4452_v49, %v3271_v47 }
  0x6d   :  { %1430 = vmatpush.bf16.msrb.mxu1 %v3032_v40  ;;  %v3143_v55 = vld [vmem:[%s6992_s1 + $0x188] sm:$0xf]  ;;  %v4420_v56 = vld [vmem:[%s6992_s1 + $0x194] sm:$0xf0]  ;;  %1456 = vmatpush.bf16.msrb.mxu0 %v3288_v43  ;;  %v3400_v62 = vor.u32 %v4484_v52, %v3399_v51  ;;  %v4398_v51 = vld [vmem:[%s6992_s1 + $0xec] sm:$0xf] }
  0x6e   :  { %v2999_v59 = vld [vmem:[%s6992_s1 + $0x68] sm:$0xf]  ;;  %v4384_v61 = vld [vmem:[%s6992_s1 + $0x74] sm:$0xf0]  ;;  %v3144_v1 = vor.u32 %v4420_v56, %v3143_v55  ;;  %v3065_v52 = vld [vmem:[%s6992_s1 + $0xf8] sm:$0xf0] }
  0x6f   :  { %1468 = vmatpush.bf16.msra.mxu2 %v3432_v32  ;;  %v3255_v63 = vld [vmem:[%s6992_s1 + $0x268] sm:$0xf]  ;;  %v4448_v0 = vld [vmem:[%s6992_s1 + $0x274] sm:$0xf0]  ;;  %v3000_v4 = vor.u32 %v4384_v61, %v2999_v59 }
  0x70   :  { %1442 = vmatpush.bf16.msra.mxu3 %v3176_v36  ;;  %v3383_v2 = vld [vmem:[%s6992_s1 + $0x368] sm:$0xf]  ;;  %v4480_v3 = vld [vmem:[%s6992_s1 + $0x374] sm:$0xf0]  ;;  %v3256_v7 = vor.u32 %v4448_v0, %v3255_v63  ;;  %v4430_v0 = vld [vmem:[%s6992_s1 + $0x1ec] sm:$0xf] }
  0x71   :  { %1431 = vmatpush.bf16.msrb.mxu1 %v3016_v54  ;;  %v3127_v5 = vld [vmem:[%s6992_s1 + $0x168] sm:$0xf]  ;;  %v4416_v6 = vld [vmem:[%s6992_s1 + $0x174] sm:$0xf0]  ;;  %1457 = vmatpush.bf16.msrb.mxu0 %v3272_v58  ;;  %v3384_v11 = vor.u32 %v4480_v3, %v3383_v2  ;;  %v3068_v3 = vor.u32 %v4398_v51, %v3065_v52 }
  0x72   :  { %v2983_v8 = vld [vmem:[%s6992_s1 + $0x48] sm:$0xf]  ;;  %v4380_v10 = vld [vmem:[%s6992_s1 + $0x54] sm:$0xf0]  ;;  %v3128_v14 = vor.u32 %v4416_v6, %v3127_v5  ;;  %v4394_v5 = vld [vmem:[%s6992_s1 + $0xcc] sm:$0xf] }
  0x73   :  { %1469 = vmatpush.bf16.msra.mxu2 %v3416_v46  ;;  %v3239_v12 = vld [vmem:[%s6992_s1 + $0x248] sm:$0xf]  ;;  %v4444_v13 = vld [vmem:[%s6992_s1 + $0x254] sm:$0xf0]  ;;  %v2984_v17 = vor.u32 %v4380_v10, %v2983_v8  ;;  %v3049_v6 = vld [vmem:[%s6992_s1 + $0xd8] sm:$0xf0] }
  0x74   :  { %1443 = vmatpush.bf16.msra.mxu3 %v3160_v50  ;;  %v3367_v15 = vld [vmem:[%s6992_s1 + $0x348] sm:$0xf]  ;;  %v4476_v16 = vld [vmem:[%s6992_s1 + $0x354] sm:$0xf0]  ;;  %v3240_v20 = vor.u32 %v4444_v13, %v3239_v12 }
  0x75   :  { %1432 = vmatpush.bf16.msrb.mxu1 %v3000_v4  ;;  %v3111_v18 = vld [vmem:[%s6992_s1 + $0x148] sm:$0xf]  ;;  %v4412_v19 = vld [vmem:[%s6992_s1 + $0x154] sm:$0xf0]  ;;  %1458 = vmatpush.bf16.msrb.mxu0 %v3256_v7  ;;  %v3368_v23 = vor.u32 %v4476_v16, %v3367_v15  ;;  %v3177_v15 = vld [vmem:[%s6992_s1 + $0x1d8] sm:$0xf0]  ;;  %v3052_v16 = vor.u32 %v4394_v5, %v3049_v6 }
  0x76   :  { %v2967_v21 = vld [vmem:[%s6992_s1 + $0x28] sm:$0xf]  ;;  %v4376_v22 = vld [vmem:[%s6992_s1 + $0x34] sm:$0xf0]  ;;  %v3112_v26 = vor.u32 %v4412_v19, %v3111_v18  ;;  %v4390_v18 = vld [vmem:[%s6992_s1 + $0xac] sm:$0xf] }
  0x77   :  { %1470 = vmatpush.bf16.msra.mxu2 %v3400_v62  ;;  %3726 = vmatmul.msk.bf16.vlgmr.msrb.gmra.mxu3 %vm1242_vm0, %v5151_v48  ;;  %v3223_v24 = vld [vmem:[%s6992_s1 + $0x228] sm:$0xf]  ;;  %v4440_v25 = vld [vmem:[%s6992_s1 + $0x234] sm:$0xf0]  ;;  %v2968_v29 = vor.u32 %v4376_v22, %v2967_v21  ;;  %v3033_v19 = vld [vmem:[%s6992_s1 + $0xb8] sm:$0xf0] }
  0x78   :  { %1444 = vmatpush.bf16.msra.mxu3 %v3144_v1  ;;  %v3351_v27 = vld [vmem:[%s6992_s1 + $0x328] sm:$0xf]  ;;  %v4472_v28 = vld [vmem:[%s6992_s1 + $0x334] sm:$0xf0]  ;;  %v3224_v33 = vor.u32 %v4440_v25, %v3223_v24  ;;  %v3193_v1 = vld [vmem:[%s6992_s1 + $0x1f8] sm:$0xf0] }
  0x79   :  { %1433 = vmatpush.bf16.msrb.mxu1 %v2984_v17  ;;  %v3095_v30 = vld [vmem:[%s6992_s1 + $0x128] sm:$0xf]  ;;  %v4408_v31 = vld [vmem:[%s6992_s1 + $0x134] sm:$0xf0]  ;;  %1459 = vmatpush.bf16.msrb.mxu0 %v3240_v20  ;;  %v3352_v38 = vor.u32 %v4472_v28, %v3351_v27  ;;  %v3196_v8 = vor.u32 %v4430_v0, %v3193_v1  ;;  %v3161_v27 = vld [vmem:[%s6992_s1 + $0x1b8] sm:$0xf0]  ;;  %v3036_v28 = vor.u32 %v4390_v18, %v3033_v19 }
  0x7a   :  { %v2951_v32 = vld [vmem:[%s6992_s1 + $0x8] sm:$0xf]  ;;  %v4372_v35 = vld [vmem:[%s6992_s1 + $0x14] sm:$0xf0]  ;;  %v3096_v44 = vor.u32 %v4408_v31, %v3095_v30  ;;  %v4386_v30 = vld [vmem:[%s6992_s1 + $0x8c] sm:$0xf] }
  0x7b   :  { %1471 = vmatpush.bf16.msra.mxu2 %v3384_v11  ;;  %v3575_v36 = vld [vmem:[%s6992_s1 + $0x4e8] sm:$0xf]  ;;  %v4528_v37 = vld [vmem:[%s6992_s1 + $0x4f4] sm:$0xf0]  ;;  %v2952_v49 = vor.u32 %v4372_v35, %v2951_v32  ;;  %v3017_v31 = vld [vmem:[%s6992_s1 + $0x98] sm:$0xf0] }
  0x7c   :  { %1445 = vmatpush.bf16.msra.mxu3 %v3128_v14  ;;  %v3079_v40 = vld [vmem:[%s6992_s1 + $0x108] sm:$0xf]  ;;  %v4436_v42 = vld [vmem:[%s6992_s1 + $0x214] sm:$0xf0]  ;;  %v3576_v54 = vor.u32 %v4528_v37, %v3575_v36  ;;  %v4426_v14 = vld [vmem:[%s6992_s1 + $0x1cc] sm:$0xf] }
  0x7d   :  { %v3207_v41 = vld [vmem:[%s6992_s1 + $0x208] sm:$0xf]  ;;  %v4468_v45 = vld [vmem:[%s6992_s1 + $0x314] sm:$0xf0]  ;;  %1434 = vmatpush.bf16.msrb.mxu1 %v2968_v29  ;;  %1460 = vmatpush.bf16.msrb.mxu0 %v3224_v33  ;;  %v3180_v21 = vor.u32 %v4426_v14, %v3177_v15  ;;  %v3113_v5 = vld [vmem:[%s6992_s1 + $0x158] sm:$0xf0] }
  0x7e   :  { %v3335_v43 = vld [vmem:[%s6992_s1 + $0x308] sm:$0xf]  ;;  %v4564_v47 = vld [vmem:[%s6992_s1 + $0x614] sm:$0xf0]  ;;  %v3208_v55 = vor.u32 %v4436_v42, %v3207_v41  ;;  %v3145_v41 = vld [vmem:[%s6992_s1 + $0x198] sm:$0xf0]  ;;  %v3020_v42 = vor.u32 %v4386_v30, %v3017_v31 }
  0x7f   :  { %1472 = vmatpush.bf16.msra.mxu2 %v3368_v23  ;;  %v3719_v46 = vld [vmem:[%s6992_s1 + $0x608] sm:$0xf]  ;;  %v4404_v50 = vld [vmem:[%s6992_s1 + $0x114] sm:$0xf0]  ;;  %v3336_v61 = vor.u32 %v4468_v45, %v3335_v43  ;;  %v3001_v45 = vld [vmem:[%s6992_s1 + $0x78] sm:$0xf0] }
  0x80   :  { %1446 = vmatpush.bf16.msra.mxu3 %v3112_v26  ;;  %v3703_v56 = vld [vmem:[%s6992_s1 + $0x5e8] sm:$0xf]  ;;  %v4560_v58 = vld [vmem:[%s6992_s1 + $0x5f4] sm:$0xf0]  ;;  %v3720_v63 = vor.u32 %v4564_v47, %v3719_v46  ;;  %v3080_v2 = vor.u32 %v4404_v50, %v3079_v40  ;;  %v4422_v26 = vld [vmem:[%s6992_s1 + $0x1ac] sm:$0xf] }
  0x81   :  { %v3559_v59 = vld [vmem:[%s6992_s1 + $0x4c8] sm:$0xf]  ;;  %v4524_v62 = vld [vmem:[%s6992_s1 + $0x4d4] sm:$0xf0]  ;;  %1435 = vmatpush.bf16.msrb.mxu1 %v2952_v49  ;;  %v3704_v4 = vor.u32 %v4560_v58, %v3703_v56  ;;  %1461 = vmatpush.bf16.msrb.mxu0 %v3208_v55  ;;  %v3164_v33 = vor.u32 %v4422_v26, %v3161_v27  ;;  %v4418_v40 = vld [vmem:[%s6992_s1 + $0x18c] sm:$0xf] }
  0x82   :  { %v3560_v7 = vor.u32 %v4524_v62, %v3559_v59  ;;  %v3687_v10 = vld [vmem:[%s6992_s1 + $0x5c8] sm:$0xf]  ;;  %v4556_v11 = vld [vmem:[%s6992_s1 + $0x5d4] sm:$0xf0]  ;;  %v3148_v47 = vor.u32 %v4418_v40, %v3145_v41  ;;  %v3129_v55 = vld [vmem:[%s6992_s1 + $0x178] sm:$0xf0] }
  0x83   :  { %1473 = vmatpush.bf16.msra.mxu2 %v3352_v38  ;;  %v3543_v12 = vld [vmem:[%s6992_s1 + $0x4a8] sm:$0xf]  ;;  %v4520_v13 = vld [vmem:[%s6992_s1 + $0x4b4] sm:$0xf0]  ;;  %v3688_v17 = vor.u32 %v4556_v11, %v3687_v10  ;;  %v4378_v59 = vld [vmem:[%s6992_s1 + $0x4c] sm:$0xf] }
  0x84   :  { %1447 = vmatpush.bf16.msra.mxu3 %v3096_v44  ;;  %1462 = vmatmul.bf16.vlgmr.msrb.gmra.mxu0 %v5031_v53  ;;  %v3544_v20 = vor.u32 %v4520_v13, %v3543_v12  ;;  %v3671_v22 = vld [vmem:[%s6992_s1 + $0x5a8] sm:$0xf]  ;;  %v4552_v23 = vld [vmem:[%s6992_s1 + $0x5b4] sm:$0xf0]  ;;  %v4382_v44 = vld [vmem:[%s6992_s1 + $0x6c] sm:$0xf] }
  0x85   :  { %1480 = vmatpush.bf16.msra.mxu1 %v3576_v54  ;;  %1513 = vmatpush.bf16.msra.mxu0 %v3720_v63  ;;  %v3527_v24 = vld [vmem:[%s6992_s1 + $0x488] sm:$0xf]  ;;  %v4516_v25 = vld [vmem:[%s6992_s1 + $0x494] sm:$0xf0]  ;;  %v3672_v29 = vor.u32 %v4552_v23, %v3671_v22  ;;  %v4414_v54 = vld [vmem:[%s6992_s1 + $0x16c] sm:$0xf]  ;;  %v3004_v56 = vor.u32 %v4382_v44, %v3001_v45 }
  0x86   :  { %1436 = vmatmul.bf16.vlgmr.msrb.gmra.mxu1 %v5042_v57  ;;  %v3528_v32 = vor.u32 %v4516_v25, %v3527_v24  ;;  %v3655_v35 = vld [vmem:[%s6992_s1 + $0x588] sm:$0xf]  ;;  %v4548_v36 = vld [vmem:[%s6992_s1 + $0x594] sm:$0xf0]  ;;  %v3132_v63 = vor.u32 %v4414_v54, %v3129_v55  ;;  %v2969_v10 = vld [vmem:[%s6992_s1 + $0x38] sm:$0xf0] }
  0x87   :  { %1474 = vmatpush.bf16.msra.mxu2 %v3336_v61  ;;  %v3511_v37 = vld [vmem:[%s6992_s1 + $0x468] sm:$0xf]  ;;  %v4512_v38 = vld [vmem:[%s6992_s1 + $0x474] sm:$0xf0]  ;;  %v3656_v43 = vor.u32 %v4548_v36, %v3655_v35  ;;  %v2985_v61 = vld [vmem:[%s6992_s1 + $0x58] sm:$0xf0] }
  0x88   :  { %1448 = vmatpush.bf16.msra.mxu3 %v3080_v2  ;;  %v3512_v46 = vor.u32 %v4512_v38, %v3511_v37  ;;  %v3639_v49 = vld [vmem:[%s6992_s1 + $0x568] sm:$0xf]  ;;  %v4544_v50 = vld [vmem:[%s6992_s1 + $0x574] sm:$0xf0]  ;;  %v2988_v6 = vor.u32 %v4378_v59, %v2985_v61  ;;  %v3097_v18 = vld [vmem:[%s6992_s1 + $0x138] sm:$0xf0] }
  0x89   :  { %1481 = vmatpush.bf16.msra.mxu1 %v3560_v7  ;;  %1532 = vmatpush.bf16.msrb.mxu0 %v3196_v8  ;;  %v3495_v51 = vld [vmem:[%s6992_s1 + $0x448] sm:$0xf]  ;;  %v4508_v52 = vld [vmem:[%s6992_s1 + $0x454] sm:$0xf0]  ;;  %v3640_v58 = vor.u32 %v4544_v50, %v3639_v49  ;;  %v4374_v8 = vld [vmem:[%s6992_s1 + $0x2c] sm:$0xf] }
  0x8a   :  { %1475 = vmatmul.bf16.vlgmr.msra.gmra.mxu2 %v5044_v60  ;;  %v3496_v62 = vor.u32 %v4508_v52, %v3495_v51  ;;  %v3623_v0 = vld [vmem:[%s6992_s1 + $0x548] sm:$0xf]  ;;  %v4540_v1 = vld [vmem:[%s6992_s1 + $0x554] sm:$0xf0]  ;;  %v2972_v19 = vor.u32 %v4374_v8, %v2969_v10  ;;  %v4370_v24 = vld [vmem:[%s6992_s1 + $0xc] sm:$0xf] }
  0x8b   :  { %1519 = vmatpush.bf16.msrb.mxu2 %v3068_v3  ;;  %1449 = vmatmul.bf16.vlgmr.msra.gmra.mxu3 %v5072_v9  ;;  %v3479_v2 = vld [vmem:[%s6992_s1 + $0x428] sm:$0xf]  ;;  %v4504_v3 = vld [vmem:[%s6992_s1 + $0x434] sm:$0xf0]  ;;  %v3624_v7 = vor.u32 %v4540_v1, %v3623_v0  ;;  %v2953_v25 = vld [vmem:[%s6992_s1 + $0x18] sm:$0xf0] }
  0x8c   :  { %1493 = vmatpush.bf16.msrb.mxu3 %v3704_v4  ;;  %v4410_v4 = vld [vmem:[%s6992_s1 + $0x14c] sm:$0xf]  ;;  %v3480_v11 = vor.u32 %v4504_v3, %v3479_v2  ;;  %v3607_v13 = vld [vmem:[%s6992_s1 + $0x528] sm:$0xf]  ;;  %v4536_v14 = vld [vmem:[%s6992_s1 + $0x534] sm:$0xf0]  ;;  %v2956_v36 = vor.u32 %v4370_v24, %v2953_v25 }
  0x8d   :  { %1482 = vmatpush.bf16.msra.mxu1 %v3544_v20  ;;  %1533 = vmatpush.bf16.msrb.mxu0 %v3180_v21  ;;  %v3116_v12 = vor.u32 %v4410_v4, %v3113_v5  ;;  %v3463_v15 = vld [vmem:[%s6992_s1 + $0x408] sm:$0xf]  ;;  %v4462_v20 = vld [vmem:[%s6992_s1 + $0x2ec] sm:$0xf]  ;;  %v3321_v21 = vld [vmem:[%s6992_s1 + $0x2f8] sm:$0xf0]  ;;  %v3608_v22 = vor.u32 %v4536_v14, %v3607_v13 }
  0x8e   :  { %v3591_v23 = vld [vmem:[%s6992_s1 + $0x508] sm:$0xf]  ;;  %v3449_v30 = vld [vmem:[%s6992_s1 + $0x3f8] sm:$0xf0]  ;;  %v3324_v31 = vor.u32 %v4462_v20, %v3321_v21  ;;  %v4458_v35 = vld [vmem:[%s6992_s1 + $0x2cc] sm:$0xf] }
  0x8f   :  { %1520 = vmatpush.bf16.msrb.mxu2 %v3052_v16  ;;  %v4500_v16 = vld [vmem:[%s6992_s1 + $0x414] sm:$0xf0]  ;;  %v3305_v37 = vld [vmem:[%s6992_s1 + $0x2d8] sm:$0xf0]  ;;  %v4402_v38 = vld [vmem:[%s6992_s1 + $0x10c] sm:$0xf] }
  0x90   :  { %1494 = vmatpush.bf16.msrb.mxu3 %v3688_v17  ;;  %v4406_v17 = vld [vmem:[%s6992_s1 + $0x12c] sm:$0xf]  ;;  %v3464_v26 = vor.u32 %v4500_v16, %v3463_v15  ;;  %v3081_v40 = vld [vmem:[%s6992_s1 + $0x118] sm:$0xf0] }
  0x91   :  { %1483 = vmatpush.bf16.msra.mxu1 %v3528_v32  ;;  %1534 = vmatpush.bf16.msrb.mxu0 %v3164_v33  ;;  %v3100_v27 = vor.u32 %v4406_v17, %v3097_v18  ;;  %v4526_v32 = vld [vmem:[%s6992_s1 + $0x4ec] sm:$0xf]  ;;  %v3577_v33 = vld [vmem:[%s6992_s1 + $0x4f8] sm:$0xf0]  ;;  %v3084_v49 = vor.u32 %v4402_v38, %v3081_v40 }
  0x92   :  { %v3580_v45 = vor.u32 %v4526_v32, %v3577_v33  ;;  %v3433_v50 = vld [vmem:[%s6992_s1 + $0x3d8] sm:$0xf0]  ;;  %v4522_v51 = vld [vmem:[%s6992_s1 + $0x4cc] sm:$0xf] }
  0x93   :  { %1521 = vmatpush.bf16.msrb.mxu2 %v3036_v28  ;;  %v4532_v28 = vld [vmem:[%s6992_s1 + $0x514] sm:$0xf0]  ;;  %v3561_v52 = vld [vmem:[%s6992_s1 + $0x4d8] sm:$0xf0]  ;;  %v4454_v55 = vld [vmem:[%s6992_s1 + $0x2ac] sm:$0xf] }
  0x94   :  { %1495 = vmatpush.bf16.msrb.mxu3 %v3672_v29  ;;  %3727 = vmatmul.msk.bf16.vlgmr.msra.gmra.mxu0 %vm1242_vm0, %v5151_v48  ;;  %v4494_v29 = vld [vmem:[%s6992_s1 + $0x3ec] sm:$0xf]  ;;  %v3592_v41 = vor.u32 %v4532_v28, %v3591_v23  ;;  %v3689_v59 = vld [vmem:[%s6992_s1 + $0x5d8] sm:$0xf0] }
  0x95   :  { %1484 = vmatpush.bf16.msra.mxu1 %v3512_v46  ;;  %1535 = vmatpush.bf16.msrb.mxu0 %v3148_v47  ;;  %v3452_v44 = vor.u32 %v4494_v29, %v3449_v30  ;;  %v4490_v46 = vld [vmem:[%s6992_s1 + $0x3cc] sm:$0xf]  ;;  %v3308_v47 = vor.u32 %v4458_v35, %v3305_v37  ;;  %v3417_v1 = vld [vmem:[%s6992_s1 + $0x3b8] sm:$0xf0] }
  0x96   :  { %v3436_v61 = vor.u32 %v4490_v46, %v3433_v50  ;;  %v4518_v2 = vld [vmem:[%s6992_s1 + $0x4ac] sm:$0xf]  ;;  %v3545_v3 = vld [vmem:[%s6992_s1 + $0x4b8] sm:$0xf0] }
  0x97   :  { %1522 = vmatpush.bf16.msrb.mxu2 %v3020_v42  ;;  %v4558_v42 = vld [vmem:[%s6992_s1 + $0x5ec] sm:$0xf]  ;;  %v3673_v8 = vld [vmem:[%s6992_s1 + $0x5b8] sm:$0xf0] }
  0x98   :  { %1496 = vmatpush.bf16.msrb.mxu3 %v3656_v43  ;;  %v3705_v43 = vld [vmem:[%s6992_s1 + $0x5f8] sm:$0xf0]  ;;  %v4450_v5 = vld [vmem:[%s6992_s1 + $0x28c] sm:$0xf] }
  0x99   :  { %1485 = vmatpush.bf16.msra.mxu1 %v3496_v62  ;;  %1536 = vmatpush.bf16.msrb.mxu0 %v3132_v63  ;;  %v3708_v54 = vor.u32 %v4558_v42, %v3705_v43  ;;  %v3564_v62 = vor.u32 %v4522_v51, %v3561_v52  ;;  %v4486_v63 = vld [vmem:[%s6992_s1 + $0x3ac] sm:$0xf]  ;;  %v3529_v15 = vld [vmem:[%s6992_s1 + $0x498] sm:$0xf0] }
  0x9a   :  { %v3420_v10 = vor.u32 %v4486_v63, %v3417_v1  ;;  %v4514_v14 = vld [vmem:[%s6992_s1 + $0x48c] sm:$0xf]  ;;  %v3257_v18 = vld [vmem:[%s6992_s1 + $0x278] sm:$0xf0] }
  0x9b   :  { %1523 = vmatpush.bf16.msrb.mxu2 %v3004_v56  ;;  %v3289_v56 = vld [vmem:[%s6992_s1 + $0x2b8] sm:$0xf0]  ;;  %v4446_v17 = vld [vmem:[%s6992_s1 + $0x26c] sm:$0xf] }
  0x9c   :  { %1497 = vmatpush.bf16.msrb.mxu3 %v3640_v58  ;;  %v4554_v58 = vld [vmem:[%s6992_s1 + $0x5cc] sm:$0xf]  ;;  %v3292_v0 = vor.u32 %v4454_v55, %v3289_v56  ;;  %v3260_v24 = vor.u32 %v4446_v17, %v3257_v18  ;;  %v3385_v25 = vld [vmem:[%s6992_s1 + $0x378] sm:$0xf0]  ;;  %v3843_v17 = vld [vmem:[%s6994_s3 + $0xe0] sm:$0xf] }
  0x9d   :  { %1486 = vmatpush.bf16.msra.mxu1 %v3480_v11  ;;  %1537 = vmatpush.bf16.msrb.mxu0 %v3116_v12  ;;  %v3692_v4 = vor.u32 %v4554_v58, %v3689_v59  ;;  %v3548_v11 = vor.u32 %v4518_v2, %v3545_v3  ;;  %v4482_v12 = vld [vmem:[%s6992_s1 + $0x38c] sm:$0xf]  ;;  %v3641_v33 = vld [vmem:[%s6992_s1 + $0x578] sm:$0xf0]  ;;  %v4595_v18 = vld [vmem:[%s6994_s3 + $0xec] sm:$0xf0] }
  0x9e   :  { %v4546_v20 = vld [vmem:[%s6992_s1 + $0x58c] sm:$0xf]  ;;  %v3369_v42 = vld [vmem:[%s6992_s1 + $0x358] sm:$0xf0] }
  0x9f   :  { %1524 = vmatpush.bf16.msrb.mxu2 %v2988_v6  ;;  %v3273_v6 = vld [vmem:[%s6992_s1 + $0x298] sm:$0xf0]  ;;  %v4478_v23 = vld [vmem:[%s6992_s1 + $0x36c] sm:$0xf] }
  0xa0   :  { %1498 = vmatpush.bf16.msrb.mxu3 %v3624_v7  ;;  %v4550_v7 = vld [vmem:[%s6992_s1 + $0x5ac] sm:$0xf]  ;;  %v3276_v13 = vor.u32 %v4450_v5, %v3273_v6  ;;  %v3625_v51 = vld [vmem:[%s6992_s1 + $0x558] sm:$0xf0]  ;;  %v6015_v6 = vld [vmem:[%s6993_s2] sm:$0xf] }
  0xa1   :  { %1487 = vmatpush.bf16.msra.mxu1 %v3464_v26  ;;  %1538 = vmatpush.bf16.msrb.mxu0 %v3100_v27  ;;  %v3676_v16 = vor.u32 %v4550_v7, %v3673_v8  ;;  %v4510_v26 = vld [vmem:[%s6992_s1 + $0x46c] sm:$0xf]  ;;  %v3513_v27 = vld [vmem:[%s6992_s1 + $0x478] sm:$0xf0] }
  0xa2   :  { %v4442_v30 = vld [vmem:[%s6992_s1 + $0x24c] sm:$0xf]  ;;  %v3516_v37 = vor.u32 %v4510_v26, %v3513_v27  ;;  %v3353_v58 = vld [vmem:[%s6992_s1 + $0x338] sm:$0xf0]  ;;  %v3844_v27 = vor.u32 %v4595_v18, %v3843_v17  ;;  %v4567_v17 = vld [vmem:[%s6994_s3 + $0xc] sm:$0xf0] }
  0xa3   :  { %1525 = vmatpush.bf16.msrb.mxu2 %v2972_v19  ;;  %v4542_v32 = vld [vmem:[%s6992_s1 + $0x56c] sm:$0xf]  ;;  %v3609_v3 = vld [vmem:[%s6992_s1 + $0x538] sm:$0xf0] }
  0xa4   :  { %1499 = vmatpush.bf16.msrb.mxu3 %v3608_v22  ;;  %1488 = vmatmul.bf16.vlgmr.msra.gmra.mxu1 %v5239_v34  ;;  %v3532_v22 = vor.u32 %v4514_v14, %v3529_v15  ;;  %v4474_v38 = vld [vmem:[%s6992_s1 + $0x34c] sm:$0xf]  ;;  %v3721_v5 = vld [vmem:[%s6992_s1 + $0x618] sm:$0xf0] }
  0xa5   :  { %1545 = vmatpush.bf16.msrb.mxu1 %v3324_v31  ;;  %1539 = vmatpush.bf16.msrb.mxu0 %v3084_v49  ;;  %v5920_v19 = vpop.f32.mrf.mxu0  ;;  %v5940_v29 = vpop.f32.mrf.mxu1  ;;  %v3241_v31 = vld [vmem:[%s6992_s1 + $0x258] sm:$0xf0]  ;;  %v4506_v43 = vld [vmem:[%s6992_s1 + $0x44c] sm:$0xf]  ;;  %v3372_v52 = vor.u32 %v4474_v38, %v3369_v42  ;;  %v3811_v42 = vld [vmem:[%s6994_s3 + $0xa0] sm:$0xf] }
  0xa6   :  { %v3244_v40 = vor.u32 %v4442_v30, %v3241_v31  ;;  %v4438_v46 = vld [vmem:[%s6992_s1 + $0x22c] sm:$0xf]  ;;  %v3465_v14 = vld [vmem:[%s6992_s1 + $0x418] sm:$0xf0]  ;;  %v3827_v30 = vld [vmem:[%s6994_s3 + $0xc0] sm:$0xf] }
  0xa7   :  { %1526 = vmatpush.bf16.msrb.mxu2 %v2956_v36  ;;  %v3388_v36 = vor.u32 %v4478_v23, %v3385_v25  ;;  %v4538_v50 = vld [vmem:[%s6992_s1 + $0x54c] sm:$0xf]  ;;  %v4627_v23 = vld [vmem:[%s6994_s3 + $0x1ec] sm:$0xf0] }
  0xa8   :  { %1500 = vmatpush.bf16.msrb.mxu3 %v3592_v41  ;;  %1540 = vmatmul.bf16.vlgmr.msrb.gmra.mxu0 %v5072_v9  ;;  %v3657_v9 = vld [vmem:[%s6992_s1 + $0x598] sm:$0xf0]  ;;  %v5954_v35 = vpop.f32.mrf.mxu2  ;;  %v4470_v55 = vld [vmem:[%s6992_s1 + $0x32c] sm:$0xf]  ;;  %v4591_v31 = vld [vmem:[%s6994_s3 + $0xcc] sm:$0xf0] }
  0xa9   :  { %1546 = vmatpush.bf16.msrb.mxu1 %v3308_v47  ;;  %1584 = vmatpush.bf16.msra.mxu0 %v3708_v54  ;;  %v3660_v28 = vor.u32 %v4546_v20, %v3657_v9  ;;  %v5959_v41 = vpop.f32.mrf.mxu3  ;;  %v3225_v47 = vld [vmem:[%s6992_s1 + $0x238] sm:$0xf0]  ;;  %v4502_v59 = vld [vmem:[%s6992_s1 + $0x42c] sm:$0xf]  ;;  %v3356_v8 = vor.u32 %v4470_v55, %v3353_v58  ;;  %v3779_v55 = vld [vmem:[%s6994_s3 + $0x60] sm:$0xf] }
  0xaa   :  { %1527 = vmatmul.bf16.vlgmr.msrb.gmra.mxu2 %v5042_v57  ;;  %v3401_v57 = vld [vmem:[%s6992_s1 + $0x398] sm:$0xf0]  ;;  %v3228_v56 = vor.u32 %v4438_v46, %v3225_v47  ;;  %v4434_v63 = vld [vmem:[%s6992_s1 + $0x20c] sm:$0xf]  ;;  %v4583_v47 = vld [vmem:[%s6994_s3 + $0x8c] sm:$0xf0] }
  0xab   :  { %1571 = vmatpush.bf16.msra.mxu2 %v3580_v45  ;;  %1501 = vmatmul.bf16.vlgmr.msrb.gmra.mxu3 %v5250_v39  ;;  %v3404_v21 = vor.u32 %v4482_v12, %v3401_v57  ;;  %v3644_v45 = vor.u32 %v4542_v32, %v3641_v33  ;;  %v4534_v1 = vld [vmem:[%s6992_s1 + $0x52c] sm:$0xf]  ;;  %v3955_v33 = vld [vmem:[%s6994_s3 + $0x1c0] sm:$0xf] }
  0xac   :  { %1558 = vmatpush.bf16.msra.mxu3 %v3452_v44  ;;  %v3497_v44 = vld [vmem:[%s6992_s1 + $0x458] sm:$0xf0]  ;;  %v4498_v57 = vld [vmem:[%s6992_s1 + $0x40c] sm:$0xf] }
  0xad   :  { %1547 = vmatpush.bf16.msrb.mxu1 %v3292_v0  ;;  %1585 = vmatpush.bf16.msra.mxu0 %v3692_v4  ;;  %v1257_v49 = vpop.f32.mrf.mxu0  ;;  %v3500_v54 = vor.u32 %v4506_v43, %v3497_v44  ;;  %v3209_v0 = vld [vmem:[%s6992_s1 + $0x218] sm:$0xf0]  ;;  %v1270_v2 = vpop.f32.mrf.mxu1  ;;  %v4562_v4 = vld [vmem:[%s6992_s1 + $0x60c] sm:$0xf]  ;;  %v3468_v26 = vor.u32 %v4498_v57, %v3465_v14  ;;  %v4587_v43 = vld [vmem:[%s6994_s3 + $0xac] sm:$0xf0] }
  0xae   :  { %v3212_v12 = vor.u32 %v4434_v63, %v3209_v0  ;;  %v4530_v20 = vld [vmem:[%s6992_s1 + $0x50c] sm:$0xf]  ;;  %v3724_v9 = vor.u32 %v4562_v4, %v3721_v5  ;;  %v3812_v46 = vor.u32 %v4587_v43, %v3811_v42  ;;  %v3763_v0 = vld [vmem:[%s6994_s3 + $0x40] sm:$0xf]  ;;  %v4603_v14 = vld [vmem:[%s6994_s3 + $0x12c] sm:$0xf0] }
  0xaf   :  { %1572 = vmatpush.bf16.msra.mxu2 %v3564_v62  ;;  %v3628_v62 = vor.u32 %v4538_v50, %v3625_v51  ;;  %v3891_v4 = vld [vmem:[%s6994_s3 + $0x140] sm:$0xf]  ;;  %v4589_v42 = vld [vmem:[%s6994_s3 + $0xc4] sm:$0xf]  ;;  %v3829_v43 = vld [vmem:[%s6994_s3 + $0xd0] sm:$0xf0] }
  0xb0   :  { %1559 = vmatpush.bf16.msra.mxu3 %v3436_v61  ;;  %v3481_v61 = vld [vmem:[%s6992_s1 + $0x438] sm:$0xf0]  ;;  %v1283_v7 = vpop.f32.mrf.mxu2 }
  0xb1   :  { %1548 = vmatpush.bf16.msrb.mxu1 %v3276_v13  ;;  %1586 = vmatpush.bf16.msra.mxu0 %v3676_v16  ;;  %v3337_v13 = vld [vmem:[%s6992_s1 + $0x318] sm:$0xf0]  ;;  %v1296_v15 = vpop.f32.mrf.mxu3  ;;  %v3612_v16 = vor.u32 %v4534_v1, %v3609_v3  ;;  %v4575_v1 = vld [vmem:[%s6994_s3 + $0x4c] sm:$0xf0] }
  0xb3   :  { %1573 = vmatpush.bf16.msra.mxu2 %v3548_v11  ;;  %v4466_v11 = vld [vmem:[%s6992_s1 + $0x30c] sm:$0xf] }
  0xb4   :  { %1560 = vmatpush.bf16.msra.mxu3 %v3420_v10  ;;  %v3484_v10 = vor.u32 %v4502_v59, %v3481_v61  ;;  %v3340_v25 = vor.u32 %v4466_v11, %v3337_v13  ;;  %v3907_v59 = vld [vmem:[%s6994_s3 + $0x160] sm:$0xf]  ;;  %v4571_v13 = vld [vmem:[%s6994_s3 + $0x2c] sm:$0xf0] }
  0xb5   :  { %1549 = vmatpush.bf16.msrb.mxu1 %v3260_v24  ;;  %1587 = vmatpush.bf16.msra.mxu0 %v3660_v28  ;;  %v230_v24 = vperm.slane %v6015_v6, 0 }
  0xb7   :  { %1574 = vmatpush.bf16.msra.mxu2 %v3532_v22  ;;  %v3971_v22 = vld [vmem:[%s6994_s3 + $0x1e0] sm:$0xf] }
  0xb8   :  { %1561 = vmatpush.bf16.msra.mxu3 %v3404_v21  ;;  %v3593_v21 = vld [vmem:[%s6992_s1 + $0x518] sm:$0xf0]  ;;  %v3972_v32 = vor.u32 %v4627_v23, %v3971_v22  ;;  %v4659_v22 = vld [vmem:[%s6994_s3 + $0x2ec] sm:$0xf0] }
  0xb9   :  { %1550 = vmatpush.bf16.msrb.mxu1 %v3244_v40  ;;  %1588 = vmatpush.bf16.msra.mxu0 %v3644_v45  ;;  %v3596_v28 = vor.u32 %v4530_v20, %v3593_v21  ;;  %v6062_v38 = vpop.f32.mrf.mxu2  ;;  %v3828_v40 = vor.u32 %v4591_v31, %v3827_v30  ;;  %v4593_v20 = vld [vmem:[%s6994_s3 + $0xe4] sm:$0xf]  ;;  %v4099_v21 = vld [vmem:[%s6994_s3 + $0x2e0] sm:$0xf]  ;;  %v3973_v30 = vld [vmem:[%s6994_s3 + $0x1f0] sm:$0xf0] }
  0xbb   :  { %1575 = vmatpush.bf16.msra.mxu2 %v3516_v37  ;;  %v1256_v37 = vadd.f32 %v5920_v19, %v230_v24  ;;  %v4619_v19 = vld [vmem:[%s6994_s3 + $0x1ac] sm:$0xf0]  ;;  %v3845_v24 = vld [vmem:[%s6994_s3 + $0xf0] sm:$0xf0] }
  0xbc   :  { %1562 = vmatpush.bf16.msra.mxu3 %v3388_v36  ;;  %v4623_v36 = vld [vmem:[%s6994_s3 + $0x1cc] sm:$0xf0] }
  0xbd   :  { %1551 = vmatpush.bf16.msrb.mxu1 %v3228_v56  ;;  %1589 = vmatpush.bf16.msra.mxu0 %v3628_v62  ;;  %v3956_v44 = vor.u32 %v4623_v36, %v3955_v33  ;;  %v1269_v45 = vadd.f32 %v5940_v29, %v1256_v37  ;;  %v3923_v29 = vld [vmem:[%s6994_s3 + $0x180] sm:$0xf]  ;;  %v4579_v56 = vld [vmem:[%s6994_s3 + $0x6c] sm:$0xf0]  ;;  %v3848_v36 = vor.u32 %v4593_v20, %v3845_v24 }
  0xbe   :  { %v3780_v62 = vor.u32 %v4579_v56, %v3779_v55  ;;  %v4051_v55 = vld [vmem:[%s6994_s3 + $0x280] sm:$0xf]  ;;  %v4647_v56 = vld [vmem:[%s6994_s3 + $0x28c] sm:$0xf0] }
  0xbf   :  { %1576 = vmatpush.bf16.msra.mxu2 %v3500_v54 }
  0xc0   :  { %1563 = vmatpush.bf16.msra.mxu3 %v3372_v52 }
  0xc1   :  { %1552 = vmatpush.bf16.msrb.mxu1 %v3212_v12  ;;  %1590 = vmatpush.bf16.msra.mxu0 %v3612_v16  ;;  %v1307_v50 = vpop.f32.mrf.mxu0  ;;  %v1320_v51 = vpop.f32.mrf.mxu1  ;;  %v3747_v12 = vld [vmem:[%s6994_s3 + $0x20] sm:$0xf] }
  0xc2   :  { %v1335_v52 = vpop.f32.mrf.mxu2  ;;  %v3748_v15 = vor.u32 %v4571_v13, %v3747_v12  ;;  %v3731_v16 = vld [vmem:[%s6994_s3] sm:$0xf]  ;;  %v4609_v13 = vld [vmem:[%s6994_s3 + $0x164] sm:$0xf] }
  0xc3   :  { %1577 = vmatpush.bf16.msra.mxu2 %v3484_v10  ;;  %v3732_v31 = vor.u32 %v4567_v17, %v3731_v16  ;;  %v3941_v52 = vld [vmem:[%s6994_s3 + $0x1b0] sm:$0xf0]  ;;  %v4573_v17 = vld [vmem:[%s6994_s3 + $0x44] sm:$0xf] }
  0xc4   :  { %1564 = vmatpush.bf16.msra.mxu3 %v3356_v8  ;;  %1553 = vmatmul.bf16.vlgmr.msrb.gmra.mxu1 %v5031_v53  ;;  %v3939_v53 = vld [vmem:[%s6994_s3 + $0x1a0] sm:$0xf]  ;;  %v3764_v8 = vor.u32 %v4575_v1, %v3763_v0 }
  0xc5   :  { %1604 = vmatpush.bf16.msra.mxu1 %v3724_v9  ;;  %1591 = vmatpush.bf16.msra.mxu0 %v3596_v28  ;;  %v3940_v49 = vor.u32 %v4619_v19, %v3939_v53  ;;  %v4625_v28 = vld [vmem:[%s6994_s3 + $0x1e4] sm:$0xf] }
  0xc6   :  { %v4621_v19 = vld [vmem:[%s6994_s3 + $0x1c4] sm:$0xf] }
  0xc7   :  { %1578 = vmatpush.bf16.msra.mxu2 %v3468_v26  ;;  %v4599_v26 = vld [vmem:[%s6994_s3 + $0x10c] sm:$0xf0] }
  0xc8   :  { %1565 = vmatpush.bf16.msra.mxu3 %v3340_v25  ;;  %1592 = vmatmul.bf16.vlgmr.msra.gmra.mxu0 %v5250_v39  ;;  %v1282_v39 = vadd.f32 %v5954_v35, %v1269_v45  ;;  %v4611_v35 = vld [vmem:[%s6994_s3 + $0x16c] sm:$0xf0]  ;;  %v3859_v25 = vld [vmem:[%s6994_s3 + $0x100] sm:$0xf]  ;;  %v3957_v45 = vld [vmem:[%s6994_s3 + $0x1d0] sm:$0xf0] }
  0xc9   :  { %2409 = vmatpush.bf16.msrb.mxu1 %v3972_v32  ;;  %v3908_v2 = vor.u32 %v4611_v35, %v3907_v59  ;;  %v6112_v3 = vpop.f32.mrf.mxu3  ;;  %v1309_v5 = vpop.f32.mrf.mxu0  ;;  %v3860_v37 = vor.u32 %v4599_v26, %v3859_v25  ;;  %v3797_v59 = vld [vmem:[%s6994_s3 + $0x90] sm:$0xf0]  ;;  %v4003_v26 = vld [vmem:[%s6994_s3 + $0x220] sm:$0xf] }
  0xca   :  { %1579 = vmatmul.bf16.vlgmr.msra.gmra.mxu2 %v5239_v34  ;;  %v4615_v34 = vld [vmem:[%s6994_s3 + $0x18c] sm:$0xf0]  ;;  %v1295_v61 = vadd.f32 %v5959_v41, %v1282_v39  ;;  %v1322_v7 = vpop.f32.mrf.mxu1 }
  0xcb   :  { %1566 = vmatmul.bf16.vlgmr.msra.gmra.mxu3 %v5044_v60  ;;  %v3795_v60 = vld [vmem:[%s6994_s3 + $0x80] sm:$0xf]  ;;  %v3924_v58 = vor.u32 %v4615_v34, %v3923_v29  ;;  %v4607_v41 = vld [vmem:[%s6994_s3 + $0x14c] sm:$0xf0]  ;;  %v3813_v29 = vld [vmem:[%s6994_s3 + $0xb0] sm:$0xf0]  ;;  %v3960_v34 = vor.u32 %v4621_v19, %v3957_v45 }
  0xcc   :  { %2396 = vmatpush.bf16.msrb.mxu3 %v3844_v27  ;;  %v3796_v54 = vor.u32 %v4583_v47, %v3795_v60  ;;  %v1308_v63 = vadd.f32 %v1307_v50, %v1295_v61  ;;  %v3892_v57 = vor.u32 %v4607_v41, %v3891_v4  ;;  %v4100_v27 = vor.u32 %v4659_v22, %v4099_v21  ;;  %v4067_v47 = vld [vmem:[%s6994_s3 + $0x2a0] sm:$0xf]  ;;  %v4585_v50 = vld [vmem:[%s6994_s3 + $0xa4] sm:$0xf]  ;;  %v4643_v4 = vld [vmem:[%s6994_s3 + $0x26c] sm:$0xf0] }
  0xcd   :  { %2410 = vmatpush.bf16.msrb.mxu1 %v3956_v44  ;;  %v6122_v10 = vpop.f32.mrf.mxu2  ;;  %v3976_v44 = vor.u32 %v4625_v28, %v3973_v30  ;;  %v3832_v60 = vor.u32 %v4589_v42, %v3829_v43  ;;  %v4052_v61 = vor.u32 %v4647_v56, %v4051_v55  ;;  %v231_v41 = vperm.slane %v6015_v6, 1  ;;  %v4577_v7 = vld [vmem:[%s6994_s3 + $0x64] sm:$0xf]  ;;  %v3733_v43 = vld [vmem:[%s6994_s3 + $0x10] sm:$0xf0] }
  0xce   :  { %v1321_v11 = vadd.f32 %v1320_v51, %v1308_v63  ;;  %2422 = vmatpush.bf16.msrb.mxu2 %v4100_v27  ;;  %v4617_v51 = vld [vmem:[%s6994_s3 + $0x1a4] sm:$0xf]  ;;  %v3925_v63 = vld [vmem:[%s6994_s3 + $0x190] sm:$0xf0]  ;;  %v4635_v27 = vld [vmem:[%s6994_s3 + $0x22c] sm:$0xf0] }
  0xcf   :  { %v3944_v35 = vor.u32 %v4617_v51, %v3941_v52  ;;  %v1347_v16 = vadd.f32 %v6112_v3, %v231_v41  ;;  %v4605_v22 = vld [vmem:[%s6994_s3 + $0x144] sm:$0xf]  ;;  %v3893_v3 = vld [vmem:[%s6994_s3 + $0x150] sm:$0xf0]  ;;  %v3851_v19 = vld [vmem:[%s6994_s3 + $0xe8] sm:$0xf] }
  0xd0   :  { %2397 = vmatpush.bf16.msrb.mxu3 %v3828_v40  ;;  %v1334_v18 = vadd.f32 %v6062_v38, %v1321_v11  ;;  %v4083_v38 = vld [vmem:[%s6994_s3 + $0x2c0] sm:$0xf]  ;;  %v4655_v40 = vld [vmem:[%s6994_s3 + $0x2cc] sm:$0xf0]  ;;  %v4569_v30 = vld [vmem:[%s6994_s3 + $0x24] sm:$0xf] }
  0xd1   :  { %2411 = vmatpush.bf16.msrb.mxu1 %v3940_v49  ;;  %v1348_v23 = vpop.f32.mrf.mxu3  ;;  %v4084_v53 = vor.u32 %v4655_v40, %v4083_v38  ;;  %v4651_v49 = vld [vmem:[%s6994_s3 + $0x2ac] sm:$0xf0]  ;;  %v1360_v28 = vadd.f32 %v6122_v10, %v1347_v16  ;;  %v3877_v10 = vld [vmem:[%s6994_s3 + $0x130] sm:$0xf0]  ;;  %v4565_v40 = vld [vmem:[%s6994_s3 + $0x4] sm:$0xf] }
  0xd2   :  { %v1610_v33 = vmax.f32 %v1334_v18, 0.0  ;;  %v4068_v39 = vor.u32 %v4651_v49, %v4067_v47  ;;  %v3765_v18 = vld [vmem:[%s6994_s3 + $0x50] sm:$0xf0]  ;;  %v4657_v47 = vld [vmem:[%s6994_s3 + $0x2e4] sm:$0xf] }
  0xd3   :  { %2423 = vmatpush.bf16.msrb.mxu2 %v4084_v53  ;;  %v3768_v25 = vor.u32 %v4573_v17, %v3765_v18  ;;  %v4631_v53 = vld [vmem:[%s6994_s3 + $0x20c] sm:$0xf0]  ;;  %v4101_v49 = vld [vmem:[%s6994_s3 + $0x2f0] sm:$0xf0]  ;;  %v3979_v16 = vld [vmem:[%s6994_s3 + $0x1e8] sm:$0xf] }
  0xd4   :  { %2398 = vmatpush.bf16.msrb.mxu3 %v3812_v46  ;;  %3728 = vmatmul.msk.bf16.vlgmr.msra.gmra.mxu1 %vm1242_vm0, %v5151_v48  ;;  %v3875_v48 = vld [vmem:[%s6994_s3 + $0x120] sm:$0xf]  ;;  %v6185_v46 = vpack.c.bf16 %v1610_v33, %v1610_v33  ;;  %v4104_v51 = vor.u32 %v4657_v47, %v4101_v49  ;;  %v4628_v17 = vld [vmem:[%s6994_s3 + $0x1f4] sm:$0xf0] }
  0xd5   :  { %2412 = vmatpush.bf16.msrb.mxu1 %v3924_v58  ;;  %v3876_v9 = vor.u32 %v4603_v14, %v3875_v48  ;;  %v1361_v32 = vpop.f32.mrf.mxu2  ;;  %v4581_v58 = vld [vmem:[%s6994_s3 + $0x84] sm:$0xf]  ;;  %v4019_v14 = vld [vmem:[%s6994_s3 + $0x240] sm:$0xf] }
  0xd6   :  { %v3800_v1 = vor.u32 %v4581_v58, %v3797_v59  ;;  %v3896_v32 = vor.u32 %v4605_v22, %v3893_v3  ;;  %v3835_v59 = vld [vmem:[%s6994_s3 + $0xc8] sm:$0xf]  ;;  %v4584_v22 = vld [vmem:[%s6994_s3 + $0x94] sm:$0xf0]  ;;  %v4645_v3 = vld [vmem:[%s6994_s3 + $0x284] sm:$0xf] }
  0xd7   :  { %2424 = vmatpush.bf16.msrb.mxu2 %v4068_v39  ;;  %v3861_v39 = vld [vmem:[%s6994_s3 + $0x110] sm:$0xf0] }
  0xd8   :  { %2399 = vmatpush.bf16.msrb.mxu3 %v3796_v54  ;;  %v3816_v54 = vor.u32 %v4585_v50, %v3813_v29  ;;  %v4596_v29 = vld [vmem:[%s6994_s3 + $0xf4] sm:$0xf0] }
  0xd9   :  { %2413 = vmatpush.bf16.msrb.mxu1 %v3908_v2  ;;  %v4035_v2 = vld [vmem:[%s6994_s3 + $0x260] sm:$0xf]  ;;  %v3852_v58 = vor.u32 %v4596_v29, %v3851_v19  ;;  %v4679_v19 = vld [vmem:[%s6994_s3 + $0x38c] sm:$0xf0]  ;;  %v3771_v29 = vld [vmem:[%s6994_s3 + $0x48] sm:$0xf] }
  0xda   :  { %v4036_v12 = vor.u32 %v4643_v4, %v4035_v2  ;;  %v4691_v2 = vld [vmem:[%s6994_s3 + $0x3ec] sm:$0xf0] }
  0xdb   :  { %2425 = vmatpush.bf16.msrb.mxu2 %v4052_v61  ;;  %v4653_v61 = vld [vmem:[%s6994_s3 + $0x2c4] sm:$0xf] }
  0xdc   :  { %2400 = vmatpush.bf16.msrb.mxu3 %v3780_v62  ;;  %v4613_v62 = vld [vmem:[%s6994_s3 + $0x184] sm:$0xf] }
  0xdd   :  { %2414 = vmatpush.bf16.msrb.mxu1 %v3892_v57  ;;  %v3928_v11 = vor.u32 %v4613_v62, %v3925_v63  ;;  %v3909_v57 = vld [vmem:[%s6994_s3 + $0x170] sm:$0xf0]  ;;  %v4592_v63 = vld [vmem:[%s6994_s3 + $0xd4] sm:$0xf0] }
  0xde   :  { %v3912_v20 = vor.u32 %v4609_v13, %v3909_v57  ;;  %v4085_v62 = vld [vmem:[%s6994_s3 + $0x2d0] sm:$0xf0]  ;;  %v4588_v13 = vld [vmem:[%s6994_s3 + $0xb4] sm:$0xf0] }
  0xdf   :  { %2426 = vmatpush.bf16.msrb.mxu2 %v4036_v12 }
  0xe0   :  { %2401 = vmatpush.bf16.msrb.mxu3 %v3764_v8  ;;  %v3781_v8 = vld [vmem:[%s6994_s3 + $0x70] sm:$0xf0] }
  0xe1   :  { %2415 = vmatpush.bf16.msrb.mxu1 %v3876_v9  ;;  %v1372_v0 = vpop.f32.mrf.mxu0  ;;  %v3784_v48 = vor.u32 %v4577_v7, %v3781_v8  ;;  %v3819_v7 = vld [vmem:[%s6994_s3 + $0xa8] sm:$0xf]  ;;  %v4649_v8 = vld [vmem:[%s6994_s3 + $0x2a4] sm:$0xf] }
  0xe2   :  { %v1373_v38 = vadd.f32 %v1372_v0, %v1360_v28  ;;  %v4088_v0 = vor.u32 %v4653_v61, %v4085_v62  ;;  %v3963_v28 = vld [vmem:[%s6994_s3 + $0x1c8] sm:$0xf] }
  0xe3   :  { %v1385_v5 = vpop.f32.mrf.mxu1  ;;  %v3755_v62 = vld [vmem:[%s6994_s3 + $0x28] sm:$0xf] }
  0xe4   :  { %2402 = vmatpush.bf16.msrb.mxu3 %v3748_v15  ;;  %v4639_v15 = vld [vmem:[%s6994_s3 + $0x24c] sm:$0xf0]  ;;  %v1386_v52 = vadd.f32 %v1385_v5, %v1373_v38  ;;  %v3836_v5 = vor.u32 %v4592_v63, %v3835_v59  ;;  %v4616_v59 = vld [vmem:[%s6994_s3 + $0x194] sm:$0xf0]  ;;  %v4633_v63 = vld [vmem:[%s6994_s3 + $0x224] sm:$0xf] }
  0xe5   :  { %2416 = vmatpush.bf16.msrb.mxu1 %v3860_v37  ;;  %v4020_v9 = vor.u32 %v4639_v15, %v4019_v14  ;;  %v4601_v37 = vld [vmem:[%s6994_s3 + $0x124] sm:$0xf]  ;;  %v4687_v14 = vld [vmem:[%s6994_s3 + $0x3cc] sm:$0xf0] }
  0xe6   :  { %v3880_v45 = vor.u32 %v4601_v37, %v3877_v10  ;;  %v4641_v37 = vld [vmem:[%s6994_s3 + $0x264] sm:$0xf]  ;;  %v4037_v10 = vld [vmem:[%s6994_s3 + $0x270] sm:$0xf0] }
  0xe7   :  { %2427 = vmatpush.bf16.msrb.mxu2 %v4020_v9 }
  0xe8   :  { %2403 = vmatpush.bf16.msrb.mxu3 %v3732_v31  ;;  %v3749_v31 = vld [vmem:[%s6994_s3 + $0x30] sm:$0xf0] }
  0xe9   :  { %2461 = vmatpush.bf16.msra.mxu1 %v3976_v44  ;;  %v1374_v23 = vpop.f32.mrf.mxu0  ;;  %v3752_v42 = vor.u32 %v4569_v30, %v3749_v31  ;;  %v3987_v44 = vld [vmem:[%s6994_s3 + $0x200] sm:$0xf]  ;;  %v4624_v30 = vld [vmem:[%s6994_s3 + $0x1d4] sm:$0xf0] }
  0xea   :  { %v1398_v21 = vpop.f32.mrf.mxu3  ;;  %v3980_v23 = vor.u32 %v4628_v17, %v3979_v16  ;;  %v4568_v16 = vld [vmem:[%s6994_s3 + $0x14] sm:$0xf0]  ;;  %v4629_v17 = vld [vmem:[%s6994_s3 + $0x204] sm:$0xf] }
  0xeb   :  { %2404 = vmatmul.bf16.vlgmr.msrb.gmra.mxu3 %v6185_v46  ;;  %v1387_v33 = vpop.f32.mrf.mxu1  ;;  %v1399_v56 = vadd.f32 %v1398_v21, %v1386_v52  ;;  %v3820_v21 = vor.u32 %v4588_v13, %v3819_v7  ;;  %v4576_v52 = vld [vmem:[%s6994_s3 + $0x54] sm:$0xf0]  ;;  %v4147_v7 = vld [vmem:[%s6994_s3 + $0x340] sm:$0xf] }
  0xec   :  { %2448 = vmatpush.bf16.msra.mxu3 %v3848_v36  ;;  %v4004_v36 = vor.u32 %v4635_v27, %v4003_v26  ;;  %v4683_v26 = vld [vmem:[%s6994_s3 + $0x3ac] sm:$0xf0]  ;;  %v3772_v61 = vor.u32 %v4576_v52, %v3771_v29  ;;  %v3821_v52 = vld [vmem:[%s6994_s3 + $0xb8] sm:$0xf0] }
  0xed   :  { %2462 = vmatpush.bf16.msra.mxu1 %v3960_v34  ;;  %v1411_v24 = vpop.f32.mrf.mxu2  ;;  %v4597_v34 = vld [vmem:[%s6994_s3 + $0x104] sm:$0xf] }
  0xee   :  { %2428 = vmatpush.bf16.msrb.mxu2 %v4004_v36  ;;  %v1412_v41 = vadd.f32 %v1411_v24, %v1399_v56  ;;  %v4053_v24 = vld [vmem:[%s6994_s3 + $0x290] sm:$0xf0]  ;;  %v3787_v36 = vld [vmem:[%s6994_s3 + $0x68] sm:$0xf]  ;;  %v4675_v56 = vld [vmem:[%s6994_s3 + $0x36c] sm:$0xf0] }
  0xef   :  { %v4056_v31 = vor.u32 %v4645_v3, %v4053_v24  ;;  %v4667_v3 = vld [vmem:[%s6994_s3 + $0x32c] sm:$0xf0]  ;;  %v4594_v24 = vld [vmem:[%s6994_s3 + $0xec] sm:$0xf] }
  0xf0   :  { %2449 = vmatpush.bf16.msra.mxu3 %v3832_v60  ;;  %v3988_v60 = vor.u32 %v4631_v53, %v3987_v44  ;;  %v4040_v44 = vor.u32 %v4641_v37, %v4037_v10  ;;  %v4179_v53 = vld [vmem:[%s6994_s3 + $0x380] sm:$0xf] }
  0xf1   :  { %2463 = vmatpush.bf16.msra.mxu1 %v3944_v35  ;;  %v3864_v35 = vor.u32 %v4597_v34, %v3861_v39  ;;  %v4180_v47 = vor.u32 %v4679_v19, %v4179_v53  ;;  %v4637_v34 = vld [vmem:[%s6994_s3 + $0x244] sm:$0xf]  ;;  %v4021_v39 = vld [vmem:[%s6994_s3 + $0x250] sm:$0xf0] }
  0xf2   :  { %v1400_v50 = vpop.f32.mrf.mxu3  ;;  %2429 = vmatpush.bf16.msrb.mxu2 %v3988_v60  ;;  %v4620_v60 = vld [vmem:[%s6994_s3 + $0x1b4] sm:$0xf0]  ;;  %v4689_v53 = vld [vmem:[%s6994_s3 + $0x3e4] sm:$0xf]  ;;  %v4229_v19 = vld [vmem:[%s6994_s3 + $0x3f0] sm:$0xf0] }
  0xf4   :  { %2450 = vmatpush.bf16.msra.mxu3 %v3816_v54  ;;  %v3736_v54 = vor.u32 %v4565_v40, %v3733_v43  ;;  %v4580_v43 = vld [vmem:[%s6994_s3 + $0x74] sm:$0xf0] }
  0xf5   :  { %2464 = vmatpush.bf16.msra.mxu1 %v3928_v11  ;;  %v1413_v55 = vpop.f32.mrf.mxu2  ;;  %v4069_v11 = vld [vmem:[%s6994_s3 + $0x2b0] sm:$0xf0]  ;;  %v3788_v50 = vor.u32 %v4580_v43, %v3787_v36  ;;  %v4590_v36 = vld [vmem:[%s6994_s3 + $0xcc] sm:$0xf]  ;;  %v3837_v43 = vld [vmem:[%s6994_s3 + $0xd8] sm:$0xf0] }
  0xf6   :  { %2474 = vmatpush.bf16.msra.mxu2 %v4104_v51  ;;  %v4072_v57 = vor.u32 %v4649_v8, %v4069_v11  ;;  %v4163_v55 = vld [vmem:[%s6994_s3 + $0x360] sm:$0xf]  ;;  %v4671_v8 = vld [vmem:[%s6994_s3 + $0x34c] sm:$0xf0]  ;;  %v3915_v11 = vld [vmem:[%s6994_s3 + $0x168] sm:$0xf]  ;;  %v3840_v29 = vor.u32 %v4590_v36, %v3837_v43 }
  0xf7   :  { %v4148_v13 = vor.u32 %v4671_v8, %v4147_v7  ;;  %v4622_v7 = vld [vmem:[%s6994_s3 + $0x1cc] sm:$0xf]  ;;  %v3965_v8 = vld [vmem:[%s6994_s3 + $0x1d8] sm:$0xf0]  ;;  %v4669_v43 = vld [vmem:[%s6994_s3 + $0x344] sm:$0xf] }
  0xf8   :  { %2451 = vmatpush.bf16.msra.mxu3 %v3800_v1  ;;  %v4227_v1 = vld [vmem:[%s6994_s3 + $0x3e0] sm:$0xf] }
  0xf9   :  { %2465 = vmatpush.bf16.msra.mxu1 %v3912_v20  ;;  %v4228_v4 = vor.u32 %v4691_v2, %v4227_v1  ;;  %v3803_v20 = vld [vmem:[%s6994_s3 + $0x88] sm:$0xf] }
  0xfa   :  { %2475 = vmatpush.bf16.msra.mxu2 %v4088_v0  ;;  %v1424_v12 = vpop.f32.mrf.mxu3  ;;  %v3804_v33 = vor.u32 %v4584_v22, %v3803_v20  ;;  %v4005_v0 = vld [vmem:[%s6994_s3 + $0x230] sm:$0xf0]  ;;  %v4131_v22 = vld [vmem:[%s6994_s3 + $0x320] sm:$0xf] }
  0xfb   :  { %2435 = vmatpush.bf16.msrb.mxu0 %v4228_v4  ;;  %v1425_v15 = vadd.f32 %v1424_v12, %v1412_v41  ;;  %v4572_v41 = vld [vmem:[%s6994_s3 + $0x34] sm:$0xf0] }
  0xfc   :  { %2452 = vmatpush.bf16.msra.mxu3 %v3784_v48  ;;  %v4211_v48 = vld [vmem:[%s6994_s3 + $0x3c0] sm:$0xf]  ;;  %v4612_v12 = vld [vmem:[%s6994_s3 + $0x174] sm:$0xf0] }
  0xfd   :  { %2466 = vmatpush.bf16.msra.mxu1 %v3896_v32  ;;  %v4212_v18 = vor.u32 %v4687_v14, %v4211_v48  ;;  %v1611_v9 = vmax.f32 %v1425_v15, 0.0  ;;  %v3739_v48 = vld [vmem:[%s6994_s3 + $0x8] sm:$0xf]  ;;  %v3756_v15 = vor.u32 %v4572_v41, %v3755_v62  ;;  %v3916_v20 = vor.u32 %v4612_v12, %v3915_v11  ;;  %v4197_v41 = vld [vmem:[%s6994_s3 + $0x3b0] sm:$0xf0] }
  0xfe   :  { %2476 = vmatpush.bf16.msra.mxu2 %v4072_v57 }
  0xff   :  { %2436 = vmatpush.bf16.msrb.mxu0 %v4212_v18  ;;  %v6372_v27 = vpack.c.bf16 %v1611_v9, %v1611_v9  ;;  %v3989_v18 = vld [vmem:[%s6994_s3 + $0x210] sm:$0xf0]  ;;  %v3899_v9 = vld [vmem:[%s6994_s3 + $0x148] sm:$0xf] }
 0x100   :  { %2453 = vmatpush.bf16.msra.mxu3 %v3768_v25  ;;  %v4195_v25 = vld [vmem:[%s6994_s3 + $0x3a0] sm:$0xf] }
 0x101   :  { %2467 = vmatpush.bf16.msra.mxu1 %v3880_v45  ;;  %v4196_v32 = vor.u32 %v4683_v26, %v4195_v25  ;;  %v6390_v40 = vpop.f32.mrf.mxu0  ;;  %v3947_v45 = vld [vmem:[%s6994_s3 + $0x1a8] sm:$0xf]  ;;  %v3853_v25 = vld [vmem:[%s6994_s3 + $0xf8] sm:$0xf0]  ;;  %v4132_v26 = vor.u32 %v4667_v3, %v4131_v22  ;;  %v4574_v22 = vld [vmem:[%s6994_s3 + $0x4c] sm:$0xf] }
 0x102   :  { %2417 = vmatmul.bf16.vlgmr.msrb.gmra.mxu1 %v6372_v27  ;;  %v1426_v38 = vpop.f32.mrf.mxu3  ;;  %2477 = vmatpush.bf16.msra.mxu2 %v4056_v31  ;;  %v3948_v51 = vor.u32 %v4620_v60, %v3947_v45  ;;  %v4604_v31 = vld [vmem:[%s6994_s3 + $0x134] sm:$0xf0]  ;;  %v232_v45 = vperm.slane %v6015_v6, 2  ;;  %v3773_v3 = vld [vmem:[%s6994_s3 + $0x58] sm:$0xf0] }
 0x103   :  { %2437 = vmatpush.bf16.msrb.mxu0 %v4196_v32  ;;  %v6407_v49 = vpop.f32.mrf.mxu1  ;;  %v4115_v38 = vld [vmem:[%s6994_s3 + $0x300] sm:$0xf] }
 0x104   :  { %2454 = vmatpush.bf16.msra.mxu3 %v3752_v42  ;;  %v3964_v42 = vor.u32 %v4624_v30, %v3963_v28  ;;  %v3740_v28 = vor.u32 %v4568_v16, %v3739_v48  ;;  %v3883_v30 = vld [vmem:[%s6994_s3 + $0x128] sm:$0xf]  ;;  %v4578_v48 = vld [vmem:[%s6994_s3 + $0x6c] sm:$0xf]  ;;  %v4181_v16 = vld [vmem:[%s6994_s3 + $0x390] sm:$0xf0] }
 0x105   :  { %2468 = vmatpush.bf16.msra.mxu1 %v3864_v35  ;;  %v4164_v35 = vor.u32 %v4675_v56, %v4163_v55  ;;  %v4213_v55 = vld [vmem:[%s6994_s3 + $0x3d0] sm:$0xf0]  ;;  %v1438_v56 = vadd.f32 %v6407_v49, %v232_v45  ;;  %v4582_v49 = vld [vmem:[%s6994_s3 + $0x8c] sm:$0xf]  ;;  %v3917_v45 = vld [vmem:[%s6994_s3 + $0x178] sm:$0xf0] }
 0x106   :  { %2478 = vmatpush.bf16.msra.mxu2 %v4040_v44 }
 0x107   :  { %2438 = vmatpush.bf16.msrb.mxu0 %v4180_v47  ;;  %v4232_v47 = vor.u32 %v4689_v53, %v4229_v19  ;;  %v4610_v19 = vld [vmem:[%s6994_s3 + $0x16c] sm:$0xf] }
 0x108   :  { %2455 = vmatpush.bf16.msra.mxu3 %v3736_v54  ;;  %v4024_v54 = vor.u32 %v4637_v34, %v4021_v39  ;;  %v3867_v34 = vld [vmem:[%s6994_s3 + $0x108] sm:$0xf]  ;;  %v4600_v39 = vld [vmem:[%s6994_s3 + $0x114] sm:$0xf0] }
 0x109   :  { %2513 = vmatpush.bf16.msrb.mxu1 %v3980_v23  ;;  %v1465_v2 = vpop.f32.mrf.mxu0  ;;  %v4608_v23 = vld [vmem:[%s6994_s3 + $0x154] sm:$0xf0] }
 0x10a   :  { %2479 = vmatpush.bf16.msra.mxu2 %v4024_v54  ;;  %v3900_v32 = vor.u32 %v4608_v23, %v3899_v9  ;;  %v4685_v54 = vld [vmem:[%s6994_s3 + $0x3c4] sm:$0xf]  ;;  %v3805_v2 = vld [vmem:[%s6994_s3 + $0x98] sm:$0xf0] }
 0x10b   :  { %2456 = vmatmul.bf16.vlgmr.msra.gmra.mxu3 %v6185_v46  ;;  %2439 = vmatpush.bf16.msrb.mxu0 %v4164_v35  ;;  %v1439_v14 = vpop.f32.mrf.mxu1  ;;  %v4216_v35 = vor.u32 %v4685_v54, %v4213_v55  ;;  %v4673_v23 = vld [vmem:[%s6994_s3 + $0x364] sm:$0xf]  ;;  %v4133_v55 = vld [vmem:[%s6994_s3 + $0x330] sm:$0xf0] }
 0x10c   :  { %2500 = vmatpush.bf16.msrb.mxu3 %v3852_v58  ;;  %v3931_v58 = vld [vmem:[%s6994_s3 + $0x188] sm:$0xf]  ;;  %v3789_v14 = vld [vmem:[%s6994_s3 + $0x78] sm:$0xf0]  ;;  %v4665_v54 = vld [vmem:[%s6994_s3 + $0x324] sm:$0xf] }
 0x10d   :  { %2514 = vmatpush.bf16.msrb.mxu1 %v3964_v42  ;;  %v3932_v4 = vor.u32 %v4616_v59, %v3931_v58  ;;  %v6459_v57 = vpop.f32.mrf.mxu2  ;;  %v4663_v42 = vld [vmem:[%s6994_s3 + $0x30c] sm:$0xf0]  ;;  %v4626_v58 = vld [vmem:[%s6994_s3 + $0x1ec] sm:$0xf]  ;;  %v3981_v59 = vld [vmem:[%s6994_s3 + $0x1f8] sm:$0xf0] }
 0x10e   :  { %v6442_v1 = vpop.f32.mrf.mxu3  ;;  %v4116_v44 = vor.u32 %v4663_v42, %v4115_v38  ;;  %v3757_v42 = vld [vmem:[%s6994_s3 + $0x38] sm:$0xf0] }
 0x10f   :  { %2440 = vmatpush.bf16.msrb.mxu0 %v4148_v13  ;;  %v3808_v13 = vor.u32 %v4582_v49, %v3805_v2  ;;  %v4656_v2 = vld [vmem:[%s6994_s3 + $0x2d4] sm:$0xf0] }
 0x110   :  { %2501 = vmatpush.bf16.msrb.mxu3 %v3836_v5  ;;  %v4008_v5 = vor.u32 %v4633_v63, %v4005_v0  ;;  %v3984_v0 = vor.u32 %v4626_v58, %v3981_v59  ;;  %v4606_v58 = vld [vmem:[%s6994_s3 + $0x14c] sm:$0xf]  ;;  %v3901_v59 = vld [vmem:[%s6994_s3 + $0x158] sm:$0xf0] }
 0x111   :  { %2515 = vmatpush.bf16.msrb.mxu1 %v3948_v51  ;;  %v6501_v10 = vpop.f32.mrf.mxu0  ;;  %v4586_v51 = vld [vmem:[%s6994_s3 + $0xac] sm:$0xf] }
 0x112   :  { %2480 = vmatpush.bf16.msra.mxu2 %v4008_v5  ;;  %2469 = vmatmul.bf16.vlgmr.msra.gmra.mxu1 %v6372_v27  ;;  %v3824_v62 = vor.u32 %v4586_v51, %v3821_v52  ;;  %v1451_v5 = vadd.f32 %v6442_v1, %v1438_v56  ;;  %v3968_v1 = vor.u32 %v4622_v7, %v3965_v8  ;;  %v4566_v51 = vld [vmem:[%s6994_s3 + $0xc] sm:$0xf]  ;;  %v4117_v7 = vld [vmem:[%s6994_s3 + $0x310] sm:$0xf0] }
 0x113   :  { %2441 = vmatpush.bf16.msrb.mxu0 %v4132_v26  ;;  %v4614_v26 = vld [vmem:[%s6994_s3 + $0x18c] sm:$0xf]  ;;  %v3920_v52 = vor.u32 %v4610_v19, %v3917_v45  ;;  %v4109_v45 = vld [vmem:[%s6994_s3 + $0x2f8] sm:$0xf0] }
 0x114   :  { %2502 = vmatpush.bf16.msrb.mxu3 %v3820_v21  ;;  %v3992_v21 = vor.u32 %v4629_v17, %v3989_v18  ;;  %v1464_v17 = vadd.f32 %v6390_v40, %v1451_v5  ;;  %v4618_v18 = vld [vmem:[%s6994_s3 + $0x1ac] sm:$0xf]  ;;  %v4661_v5 = vld [vmem:[%s6994_s3 + $0x304] sm:$0xf] }
 0x115   :  { %2516 = vmatpush.bf16.msrb.mxu1 %v3932_v4  ;;  %v1478_v60 = vpop.f32.mrf.mxu2  ;;  %v4681_v4 = vld [vmem:[%s6994_s3 + $0x3a4] sm:$0xf]  ;;  %v4602_v8 = vld [vmem:[%s6994_s3 + $0x12c] sm:$0xf] }
 0x116   :  { %v1452_v37 = vpop.f32.mrf.mxu3  ;;  %2481 = vmatpush.bf16.msra.mxu2 %v3992_v21  ;;  %v4200_v11 = vor.u32 %v4681_v4, %v4197_v41  ;;  %v3792_v21 = vor.u32 %v4578_v48, %v3789_v14  ;;  %v3904_v4 = vor.u32 %v4606_v58, %v3901_v59  ;;  %v4652_v14 = vld [vmem:[%s6994_s3 + $0x2b4] sm:$0xf0]  ;;  %v4658_v19 = vld [vmem:[%s6994_s3 + $0x2ec] sm:$0xf] }
 0x117   :  { %2442 = vmatpush.bf16.msrb.mxu0 %v4116_v44  ;;  %v4149_v44 = vld [vmem:[%s6994_s3 + $0x350] sm:$0xf0] }
 0x118   :  { %2503 = vmatpush.bf16.msrb.mxu3 %v3804_v33  ;;  %v3856_v33 = vor.u32 %v4594_v24, %v3853_v25  ;;  %v4165_v24 = vld [vmem:[%s6994_s3 + $0x370] sm:$0xf0]  ;;  %v1477_v25 = vadd.f32 %v6459_v57, %v1464_v17  ;;  %v4570_v57 = vld [vmem:[%s6994_s3 + $0x2c] sm:$0xf]  ;;  %v3869_v17 = vld [vmem:[%s6994_s3 + $0x118] sm:$0xf0] }
 0x119   :  { %2517 = vmatpush.bf16.msrb.mxu1 %v3916_v20  ;;  %v1517_v63 = vpop.f32.mrf.mxu0  ;;  %v3949_v20 = vld [vmem:[%s6994_s3 + $0x1b8] sm:$0xf0] }
 0x11a   :  { %v3952_v40 = vor.u32 %v4618_v18, %v3949_v20  ;;  %v4059_v20 = vld [vmem:[%s6994_s3 + $0x288] sm:$0xf] }
 0x11b   :  { %2487 = vmatpush.bf16.msra.mxu0 %v4232_v47  ;;  %v4152_v47 = vor.u32 %v4669_v43, %v4149_v44  ;;  %v3995_v43 = vld [vmem:[%s6994_s3 + $0x208] sm:$0xf]  ;;  %v4632_v44 = vld [vmem:[%s6994_s3 + $0x214] sm:$0xf0] }
 0x11c   :  { %2504 = vmatpush.bf16.msrb.mxu3 %v3788_v50  ;;  %v3884_v50 = vor.u32 %v4604_v31, %v3883_v30  ;;  %v4168_v31 = vor.u32 %v4673_v23, %v4165_v24 }
 0x11d   :  { %2518 = vmatpush.bf16.msrb.mxu1 %v3900_v32 }
 0x11f   :  { %2488 = vmatpush.bf16.msra.mxu0 %v4216_v35 }
 0x120   :  { %2505 = vmatpush.bf16.msrb.mxu3 %v3772_v61  ;;  %v3868_v61 = vor.u32 %v4600_v39, %v3867_v34  ;;  %v4107_v34 = vld [vmem:[%s6994_s3 + $0x2e8] sm:$0xf]  ;;  %v4660_v39 = vld [vmem:[%s6994_s3 + $0x2f4] sm:$0xf0] }
 0x121   :  { %2519 = vmatpush.bf16.msrb.mxu1 %v3884_v50  ;;  %v1489_v12 = vpop.f32.mrf.mxu1 }
 0x122   :  { %v1490_v32 = vadd.f32 %v1489_v12, %v1477_v25 }
 0x123   :  { %2489 = vmatpush.bf16.msra.mxu0 %v4200_v11  ;;  %v3885_v11 = vld [vmem:[%s6994_s3 + $0x138] sm:$0xf0] }
 0x124   :  { %2506 = vmatpush.bf16.msrb.mxu3 %v3756_v15  ;;  %v4677_v15 = vld [vmem:[%s6994_s3 + $0x384] sm:$0xf] }
 0x125   :  { %2520 = vmatpush.bf16.msrb.mxu1 %v3868_v61  ;;  %v4184_v9 = vor.u32 %v4677_v15, %v4181_v16  ;;  %v6603_v30 = vpop.f32.mrf.mxu0  ;;  %v4136_v61 = vor.u32 %v4665_v54, %v4133_v55  ;;  %v3888_v15 = vor.u32 %v4602_v8, %v3885_v11  ;;  %v4598_v16 = vld [vmem:[%s6994_s3 + $0x10c] sm:$0xf]  ;;  %v4235_v54 = vld [vmem:[%s6994_s3 + $0x3e8] sm:$0xf]  ;;  %v4692_v55 = vld [vmem:[%s6994_s3 + $0x3f4] sm:$0xf0] }
 0x126   :  { %v4061_v8 = vld [vmem:[%s6994_s3 + $0x298] sm:$0xf0]  ;;  %v4203_v11 = vld [vmem:[%s6994_s3 + $0x3a8] sm:$0xf] }
 0x127   :  { %2490 = vmatpush.bf16.msra.mxu0 %v4184_v9  ;;  %v4648_v9 = vld [vmem:[%s6994_s3 + $0x294] sm:$0xf0] }
 0x128   :  { %2507 = vmatpush.bf16.msrb.mxu3 %v3740_v28  ;;  %2521 = vmatmul.bf16.vlgmr.msrb.gmra.mxu1 %v6372_v27  ;;  %v3933_v28 = vld [vmem:[%s6994_s3 + $0x198] sm:$0xf0] }
 0x129   :  { %2565 = vmatpush.bf16.msra.mxu1 %v3984_v0  ;;  %v1491_v36 = vpop.f32.mrf.mxu1  ;;  %v3936_v38 = vor.u32 %v4614_v26, %v3933_v28  ;;  %v4091_v0 = vld [vmem:[%s6994_s3 + $0x2c8] sm:$0xf]  ;;  %v4640_v26 = vld [vmem:[%s6994_s3 + $0x254] sm:$0xf0] }
 0x12a   :  { %v4092_v48 = vor.u32 %v4656_v2, %v4091_v0  ;;  %v4219_v0 = vld [vmem:[%s6994_s3 + $0x3c8] sm:$0xf]  ;;  %v4688_v2 = vld [vmem:[%s6994_s3 + $0x3d4] sm:$0xf0] }
 0x12b   :  { %2508 = vmatmul.bf16.vlgmr.msrb.gmra.mxu3 %v6185_v46  ;;  %2491 = vmatpush.bf16.msra.mxu0 %v4168_v31 }
 0x12c   :  { %2552 = vmatpush.bf16.msra.mxu3 %v3856_v33  ;;  %v3776_v33 = vor.u32 %v4574_v22, %v3773_v3  ;;  %v3872_v22 = vor.u32 %v4598_v16, %v3869_v17  ;;  %v4043_v3 = vld [vmem:[%s6994_s3 + $0x268] sm:$0xf]  ;;  %v4680_v16 = vld [vmem:[%s6994_s3 + $0x394] sm:$0xf0] }
 0x12d   :  { %2566 = vmatpush.bf16.msra.mxu1 %v3968_v1  ;;  %v1528_v60 = vpop.f32.mrf.mxu2  ;;  %v1543_v35 = vpop.f32.mrf.mxu0  ;;  %v4075_v1 = vld [vmem:[%s6994_s3 + $0x2a8] sm:$0xf] }
 0x12e   :  { %v1502_v37 = vpop.f32.mrf.mxu3  ;;  %v4076_v18 = vor.u32 %v4652_v14, %v4075_v1  ;;  %v4236_v35 = vor.u32 %v4692_v55, %v4235_v54  ;;  %v4642_v1 = vld [vmem:[%s6994_s3 + $0x26c] sm:$0xf]  ;;  %v4045_v14 = vld [vmem:[%s6994_s3 + $0x278] sm:$0xf0] }
 0x12f   :  { %v1503_v53 = vadd.f32 %v1502_v37, %v1490_v32  ;;  %2492 = vmatpush.bf16.msra.mxu0 %v4152_v47  ;;  %v4048_v17 = vor.u32 %v4642_v1, %v4045_v14  ;;  %v4173_v54 = vld [vmem:[%s6994_s3 + $0x378] sm:$0xf0] }
 0x130   :  { %2553 = vmatpush.bf16.msra.mxu3 %v3840_v29  ;;  %v3760_v29 = vor.u32 %v4570_v57, %v3757_v42 }
 0x131   :  { %2567 = vmatpush.bf16.msra.mxu1 %v3952_v40  ;;  %v1516_v50 = vadd.f32 %v6501_v10, %v1503_v53  ;;  %v3741_v10 = vld [vmem:[%s6994_s3 + $0x18] sm:$0xf0]  ;;  %v4060_v40 = vor.u32 %v4648_v9, %v4059_v20  ;;  %v4638_v20 = vld [vmem:[%s6994_s3 + $0x24c] sm:$0xf] }
 0x132   :  { %v3744_v63 = vor.u32 %v4566_v51, %v3741_v10  ;;  %v4093_v51 = vld [vmem:[%s6994_s3 + $0x2d8] sm:$0xf0] }
 0x133   :  { %v1612_v56 = vmax.f32 %v1516_v50, 0.0  ;;  %2493 = vmatpush.bf16.msra.mxu0 %v4136_v61  ;;  %v3996_v50 = vor.u32 %v4632_v44, %v3995_v43  ;;  %v4650_v61 = vld [vmem:[%s6994_s3 + $0x2ac] sm:$0xf]  ;;  %v4029_v9 = vld [vmem:[%s6994_s3 + $0x258] sm:$0xf0] }
 0x134   :  { %2554 = vmatpush.bf16.msra.mxu3 %v3824_v62  ;;  %v4108_v62 = vor.u32 %v4660_v39, %v4107_v34  ;;  %v4654_v39 = vld [vmem:[%s6994_s3 + $0x2cc] sm:$0xf]  ;;  %v4237_v43 = vld [vmem:[%s6994_s3 + $0x3f8] sm:$0xf0] }
 0x135   :  { %2568 = vmatpush.bf16.msra.mxu1 %v3936_v38  ;;  %v6648_v49 = vpack.c.bf16 %v1612_v56, %v1612_v56  ;;  %v1530_v12 = vpop.f32.mrf.mxu2  ;;  %v4096_v59 = vor.u32 %v4654_v39, %v4093_v51  ;;  %v6846_v39 = vld [vmem:[%s6995_s4] sm:$0xf] }
 0x136   :  { %v1504_v41 = vpop.f32.mrf.mxu3  ;;  %v4684_v12 = vld [vmem:[%s6994_s3 + $0x3b4] sm:$0xf0] }
 0x137   :  { %2430 = vmatmul.bf16.vlgmr.msrb.gmra.mxu2 %v6648_v49 }
 0x138   :  { %2555 = vmatpush.bf16.msra.mxu3 %v3808_v13  ;;  %v4120_v13 = vor.u32 %v4661_v5, %v4117_v7  ;;  %2526 = vmatpush.bf16.msrb.mxu2 %v4108_v62  ;;  %v4077_v62 = vld [vmem:[%s6994_s3 + $0x2b8] sm:$0xf0]  ;;  %v4220_v5 = vor.u32 %v4688_v2, %v4219_v0  ;;  %v4646_v7 = vld [vmem:[%s6994_s3 + $0x28c] sm:$0xf] }
 0x139   :  { %2569 = vmatpush.bf16.msra.mxu1 %v3920_v52  ;;  %v4666_v2 = vld [vmem:[%s6994_s3 + $0x32c] sm:$0xf] }
 0x13a   :  { %2494 = vmatpush.bf16.msra.mxu0 %v4120_v13  ;;  %v4064_v13 = vor.u32 %v4646_v7, %v4061_v8  ;;  %v4125_v7 = vld [vmem:[%s6994_s3 + $0x318] sm:$0xf0] }
 0x13c   :  { %2556 = vmatpush.bf16.msra.mxu3 %v3792_v21  ;;  %2527 = vmatpush.bf16.msrb.mxu2 %v4092_v48  ;;  %v233_v21 = vperm.slane %v6015_v6, 3  ;;  %v4027_v6 = vld [vmem:[%s6994_s3 + $0x248] sm:$0xf]  ;;  %v4204_v48 = vor.u32 %v4684_v12, %v4203_v11 }
 0x13d   :  { %2570 = vmatpush.bf16.msra.mxu1 %v3904_v4  ;;  %v4028_v32 = vor.u32 %v4640_v26, %v4027_v6  ;;  %v4080_v4 = vor.u32 %v4650_v61, %v4077_v62 }
 0x13e   :  { %v1529_v23 = vadd.f32 %v1528_v60, %v233_v21  ;;  %v4171_v21 = vld [vmem:[%s6994_s3 + $0x368] sm:$0xf] }
 0x140   :  { %2557 = vmatpush.bf16.msra.mxu3 %v3776_v33  ;;  %2528 = vmatpush.bf16.msrb.mxu2 %v4076_v18  ;;  %v1542_v28 = vadd.f32 %v6603_v30, %v1529_v23  ;;  %v4011_v33 = vld [vmem:[%s6994_s3 + $0x228] sm:$0xf]  ;;  %v4013_v23 = vld [vmem:[%s6994_s3 + $0x238] sm:$0xf0] }
 0x141   :  { %2571 = vmatpush.bf16.msra.mxu1 %v3888_v15  ;;  %v1554_v24 = vpop.f32.mrf.mxu1  ;;  %v4187_v15 = vld [vmem:[%s6994_s3 + $0x388] sm:$0xf] }
 0x142   :  { %v1555_v36 = vadd.f32 %v1554_v24, %v1542_v28  ;;  %v4188_v18 = vor.u32 %v4680_v16, %v4187_v15  ;;  %v4155_v24 = vld [vmem:[%s6994_s3 + $0x348] sm:$0xf]  ;;  %v4700_v15 = vld [vmem:[%s6996_s5 + $0x38] sm:$0xff] }
 0x144   :  { %2558 = vmatpush.bf16.msra.mxu3 %v3760_v29  ;;  %2529 = vmatpush.bf16.msrb.mxu2 %v4060_v40  ;;  %v4112_v29 = vor.u32 %v4658_v19, %v4109_v45  ;;  %v4032_v40 = vor.u32 %v4638_v20, %v4029_v9  ;;  %v4686_v19 = vld [vmem:[%s6994_s3 + $0x3cc] sm:$0xf]  ;;  %v4221_v45 = vld [vmem:[%s6994_s3 + $0x3d8] sm:$0xf0] }
 0x145   :  { %2572 = vmatpush.bf16.msra.mxu1 %v3872_v22  ;;  %v1593_v31 = vpop.f32.mrf.mxu0  ;;  %v4676_v22 = vld [vmem:[%s6994_s3 + $0x374] sm:$0xf0] }
 0x147   :  { %2482 = vmatmul.bf16.vlgmr.msra.gmra.mxu2 %v6648_v49 }
 0x148   :  { %2559 = vmatpush.bf16.msra.mxu3 %v3744_v63  ;;  %2573 = vmatmul.bf16.vlgmr.msra.gmra.mxu1 %v6372_v27  ;;  %v4636_v27 = vld [vmem:[%s6994_s3 + $0x234] sm:$0xf0] }
 0x149   :  { %v1556_v57 = vpop.f32.mrf.mxu1  ;;  %v4012_v30 = vor.u32 %v4636_v27, %v4011_v33  ;;  %v4139_v33 = vld [vmem:[%s6994_s3 + $0x328] sm:$0xf]  ;;  %v4668_v27 = vld [vmem:[%s6994_s3 + $0x334] sm:$0xf0] }
 0x14a   :  { %v4140_v57 = vor.u32 %v4668_v27, %v4139_v33  ;;  %v1751_v27 = vperm.slane %v6846_v39, 3 }
 0x14b   :  { %2560 = vmatmul.bf16.vlgmr.msra.gmra.mxu3 %v6185_v46  ;;  %v4644_v46 = vld [vmem:[%s6994_s3 + $0x274] sm:$0xf0] }
 0x14c   :  { %v4044_v25 = vor.u32 %v4644_v46, %v4043_v3  ;;  %v4172_v3 = vor.u32 %v4676_v22, %v4171_v21  ;;  %v4634_v46 = vld [vmem:[%s6994_s3 + $0x22c] sm:$0xf]  ;;  %2872 = vmatpush.bf16.msrb.mxu3 %v4700_v15 }
 0x14d   :  { %v1580_v42 = vpop.f32.mrf.mxu2  ;;  %v1595_v60 = vpop.f32.mrf.mxu0  ;;  %v4016_v26 = vor.u32 %v4634_v46, %v4013_v23  ;;  %v4698_v21 = vld [vmem:[%s6996_s5 + $0x28] sm:$0xff]  ;;  %v4696_v46 = vld [vmem:[%s6996_s5 + $0x18] sm:$0xff] }
 0x14e   :  { %2530 = vmatpush.bf16.msrb.mxu2 %v4044_v25  ;;  %v1567_v37 = vpop.f32.mrf.mxu3  ;;  %v4672_v25 = vld [vmem:[%s6994_s3 + $0x354] sm:$0xf0]  ;;  %v4224_v60 = vor.u32 %v4686_v19, %v4221_v45  ;;  %v4702_v19 = vld [vmem:[%s6996_s5 + $0x48] sm:$0xff] }
 0x14f   :  { %v1568_v38 = vadd.f32 %v1567_v37, %v1555_v36  ;;  %v4156_v28 = vor.u32 %v4672_v25, %v4155_v24  ;;  %v4123_v37 = vld [vmem:[%s6994_s3 + $0x308] sm:$0xf]  ;;  %v4708_v23 = vld [vmem:[%s6996_s5 + $0x78] sm:$0xff]  ;;  %v4695_v25 = vld [vmem:[%s6996_s5 + $0x10] sm:$0xff] }
 0x150   :  { %2885 = vmatpush.bf16.msrb.mxu1 %v4708_v23  ;;  %v4714_v45 = vld [vmem:[%s6996_s5 + $0xa8] sm:$0xff] }
 0x151   :  { %v1581_v53 = vadd.f32 %v1580_v42, %v1568_v38  ;;  %v1606_v34 = vpop.f32.mrf.mxu1  ;;  %v4664_v38 = vld [vmem:[%s6994_s3 + $0x314] sm:$0xf0] }
 0x152   :  { %2531 = vmatpush.bf16.msrb.mxu2 %v4028_v32  ;;  %v3997_v32 = vld [vmem:[%s6994_s3 + $0x218] sm:$0xf0]  ;;  %v4124_v44 = vor.u32 %v4664_v38, %v4123_v37 }
 0x153   :  { %v1594_v47 = vadd.f32 %v1593_v31, %v1581_v53  ;;  %v4630_v31 = vld [vmem:[%s6994_s3 + $0x20c] sm:$0xf] }
 0x154   :  { %v4000_v36 = vor.u32 %v4630_v31, %v3997_v32  ;;  %v4693_v31 = vld [vmem:[%s6996_s5] sm:$0xff] }
 0x155   :  { %v1607_v52 = vadd.f32 %v1606_v34, %v1594_v47  ;;  %v1582_v56 = vpop.f32.mrf.mxu2  ;;  %v4682_v47 = vld [vmem:[%s6994_s3 + $0x3ac] sm:$0xf]  ;;  %v4189_v34 = vld [vmem:[%s6994_s3 + $0x398] sm:$0xf0]  ;;  %v4705_v32 = vld [vmem:[%s6996_s5 + $0x60] sm:$0xff] }
 0x156   :  { %2532 = vmatpush.bf16.msrb.mxu2 %v4012_v30  ;;  %v1569_v10 = vpop.f32.mrf.mxu3  ;;  %v4690_v30 = vld [vmem:[%s6994_s3 + $0x3ec] sm:$0xf] }
 0x157   :  { %v1613_v58 = vmax.f32 %v1607_v52, 0.0  ;;  %v4240_v53 = vor.u32 %v4690_v30, %v4237_v43  ;;  %v1748_v52 = vperm.slane %v6846_v39, 0  ;;  %v4674_v10 = vld [vmem:[%s6994_s3 + $0x36c] sm:$0xf]  ;;  %v4715_v30 = vld [vmem:[%s6996_s5 + $0xb0] sm:$0xff] }
 0x158   :  { %v4176_v55 = vor.u32 %v4674_v10, %v4173_v54  ;;  %v4710_v10 = vld [vmem:[%s6996_s5 + $0x88] sm:$0xff] }
 0x159   :  { %v6740_v63 = vpack.c.bf16 %v1613_v58, %v1613_v58  ;;  %v1608_v41 = vpop.f32.mrf.mxu1  ;;  %v4670_v58 = vld [vmem:[%s6994_s3 + $0x34c] sm:$0xf] }
 0x15a   :  { %2533 = vmatpush.bf16.msrb.mxu2 %v3996_v50  ;;  %v4205_v50 = vld [vmem:[%s6994_s3 + $0x3b8] sm:$0xf0] }
 0x15b   :  { %2443 = vmatmul.bf16.vlgmr.msrb.gmra.mxu0 %v6740_v63 }
 0x15c   :  { %2539 = vmatpush.bf16.msrb.mxu0 %v4236_v35 }
 0x15d   :  { %2534 = vmatmul.bf16.vlgmr.msrb.gmra.mxu2 %v6648_v49 }
 0x15e   :  { %2578 = vmatpush.bf16.msra.mxu2 %v4112_v29  ;;  %v4678_v29 = vld [vmem:[%s6994_s3 + $0x38c] sm:$0xf] }
 0x15f   :  { %v4192_v51 = vor.u32 %v4678_v29, %v4189_v34  ;;  %v4712_v34 = vld [vmem:[%s6996_s5 + $0x98] sm:$0xff] }
 0x160   :  { %2540 = vmatpush.bf16.msrb.mxu0 %v4220_v5  ;;  %v4662_v5 = vld [vmem:[%s6994_s3 + $0x30c] sm:$0xf] }
 0x161   :  { %v4128_v12 = vor.u32 %v4662_v5, %v4125_v7 }
 0x162   :  { %2579 = vmatpush.bf16.msra.mxu2 %v4096_v59  ;;  %v4157_v59 = vld [vmem:[%s6994_s3 + $0x358] sm:$0xf0] }
 0x163   :  { %v4160_v0 = vor.u32 %v4670_v58, %v4157_v59  ;;  %v4709_v58 = vld [vmem:[%s6996_s5 + $0x80] sm:$0xff]  ;;  %v4724_v59 = vld [vmem:[%s6996_s5 + $0xf8] sm:$0xff] }
 0x164   :  { %2541 = vmatpush.bf16.msrb.mxu0 %v4204_v48 }
 0x166   :  { %2580 = vmatpush.bf16.msra.mxu2 %v4080_v4  ;;  %v4141_v4 = vld [vmem:[%s6994_s3 + $0x338] sm:$0xf0] }
 0x167   :  { %v4144_v41 = vor.u32 %v4666_v2, %v4141_v4  ;;  %v4722_v2 = vld [vmem:[%s6996_s5 + $0xe8] sm:$0xff] }
 0x168   :  { %2542 = vmatpush.bf16.msrb.mxu0 %v4188_v18  ;;  %v4699_v18 = vld [vmem:[%s6996_s5 + $0x30] sm:$0xff] }
 0x169   :  { %2873 = vmatpush.bf16.msrb.mxu3 %v4699_v18 }
 0x16a   :  { %2581 = vmatpush.bf16.msra.mxu2 %v4064_v13  ;;  %v1749_v13 = vperm.slane %v6846_v39, 1 }
 0x16b   :  { %2495 = vmatmul.bf16.vlgmr.msra.gmra.mxu0 %v6740_v63 }
 0x16c   :  { %2543 = vmatpush.bf16.msrb.mxu0 %v4172_v3 }
 0x16d   :  { %2874 = vmatpush.bf16.msrb.mxu3 %v4698_v21 }
 0x16e   :  { %2582 = vmatpush.bf16.msra.mxu2 %v4048_v17  ;;  %v2405_v6 = vpop.f32.mrf.mxu3  ;;  %v1750_v17 = vperm.slane %v6846_v39, 2  ;;  %v4711_v39 = vld [vmem:[%s6996_s5 + $0x90] sm:$0xff] }
 0x16f   :  { %v2406_v56 = vadd.f32 %v2405_v6, %v1748_v52  ;;  %v4707_v6 = vld [vmem:[%s6996_s5 + $0x70] sm:$0xff] }
 0x170   :  { %2544 = vmatpush.bf16.msrb.mxu0 %v4156_v28  ;;  %2886 = vmatpush.bf16.msrb.mxu1 %v4707_v6  ;;  %v4706_v28 = vld [vmem:[%s6996_s5 + $0x68] sm:$0xff] }
 0x172   :  { %2583 = vmatpush.bf16.msra.mxu2 %v4032_v40  ;;  %v4697_v40 = vld [vmem:[%s6996_s5 + $0x20] sm:$0xff] }
 0x173   :  { %2875 = vmatpush.bf16.msrb.mxu3 %v4697_v40 }
 0x174   :  { %2545 = vmatpush.bf16.msrb.mxu0 %v4140_v57  ;;  %2887 = vmatpush.bf16.msrb.mxu1 %v4706_v28  ;;  %v4716_v57 = vld [vmem:[%s6996_s5 + $0xb8] sm:$0xff] }
 0x176   :  { %2584 = vmatpush.bf16.msra.mxu2 %v4016_v26  ;;  %v2407_v42 = vpop.f32.mrf.mxu3  ;;  %v4694_v26 = vld [vmem:[%s6996_s5 + $0x8] sm:$0xff] }
 0x177   :  { %2876 = vmatpush.bf16.msrb.mxu3 %v4696_v46  ;;  %v4703_v42 = vld [vmem:[%s6996_s5 + $0x50] sm:$0xff] }
 0x178   :  { %2546 = vmatpush.bf16.msrb.mxu0 %v4124_v44  ;;  %2888 = vmatpush.bf16.msrb.mxu1 %v4705_v32 }
 0x17a   :  { %2585 = vmatpush.bf16.msra.mxu2 %v4000_v36  ;;  %v4704_v36 = vld [vmem:[%s6996_s5 + $0x58] sm:$0xff] }
 0x17b   :  { %2547 = vmatmul.bf16.vlgmr.msrb.gmra.mxu0 %v6740_v63  ;;  %2877 = vmatpush.bf16.msrb.mxu3 %v4695_v25 }
 0x17c   :  { %2591 = vmatpush.bf16.msra.mxu0 %v4240_v53  ;;  %2889 = vmatpush.bf16.msrb.mxu1 %v4704_v36 }
 0x17d   :  { %2586 = vmatmul.bf16.vlgmr.msra.gmra.mxu2 %v6648_v49  ;;  %v4208_v49 = vor.u32 %v4682_v47, %v4205_v50  ;;  %v4701_v47 = vld [vmem:[%s6996_s5 + $0x40] sm:$0xff] }
 0x17e   :  { %2898 = vmatpush.bf16.msrb.mxu2 %v4716_v57  ;;  %v4713_v50 = vld [vmem:[%s6996_s5 + $0xa0] sm:$0xff] }
 0x17f   :  { %v2418_v35 = vpop.f32.mrf.mxu1  ;;  %2878 = vmatpush.bf16.msrb.mxu3 %v4694_v26 }
 0x180   :  { %2592 = vmatpush.bf16.msra.mxu0 %v4224_v60  ;;  %v6861_v62 = vadd.f32 %v2418_v35, %v2406_v56  ;;  %2890 = vmatpush.bf16.msrb.mxu1 %v4703_v42 }
 0x182   :  { %2899 = vmatpush.bf16.msrb.mxu2 %v4715_v30 }
 0x183   :  { %2879 = vmatpush.bf16.msrb.mxu3 %v4693_v31 }
 0x184   :  { %2593 = vmatpush.bf16.msra.mxu0 %v4208_v49  ;;  %2891 = vmatpush.bf16.msrb.mxu1 %v4702_v19 }
 0x186   :  { %2900 = vmatpush.bf16.msrb.mxu2 %v4714_v45 }
 0x187   :  { %v2420_v8 = vpop.f32.mrf.mxu1 }
 0x188   :  { %2594 = vmatpush.bf16.msra.mxu0 %v4192_v51  ;;  %2892 = vmatpush.bf16.msrb.mxu1 %v4701_v47 }
 0x18a   :  { %2901 = vmatpush.bf16.msrb.mxu2 %v4713_v50 }
 0x18c   :  { %2595 = vmatpush.bf16.msra.mxu0 %v4176_v55 }
 0x18e   :  { %v2457_v61 = vpop.f32.mrf.mxu3  ;;  %2902 = vmatpush.bf16.msrb.mxu2 %v4712_v34 }
 0x18f   :  { %v2458_v48 = vadd.f32 %v2457_v61, %v1749_v13  ;;  %v2470_v1 = vpop.f32.mrf.mxu1 }
 0x190   :  { %2596 = vmatpush.bf16.msra.mxu0 %v4160_v0 }
 0x191   :  { %v6876_v14 = vadd.f32 %v2470_v1, %v2458_v48  ;;  %v4719_v48 = vld [vmem:[%s6996_s5 + $0xd0] sm:$0xff] }
 0x192   :  { %2903 = vmatpush.bf16.msrb.mxu2 %v4711_v39 }
 0x194   :  { %2597 = vmatpush.bf16.msra.mxu0 %v4144_v41  ;;  %v4721_v41 = vld [vmem:[%s6996_s5 + $0xe0] sm:$0xff] }
 0x196   :  { %v2459_v11 = vpop.f32.mrf.mxu3  ;;  %2904 = vmatpush.bf16.msrb.mxu2 %v4710_v10 }
 0x197   :  { %v2472_v16 = vpop.f32.mrf.mxu1  ;;  %v4720_v11 = vld [vmem:[%s6996_s5 + $0xd8] sm:$0xff] }
 0x198   :  { %2598 = vmatpush.bf16.msra.mxu0 %v4128_v12  ;;  %v4717_v16 = vld [vmem:[%s6996_s5 + $0xc0] sm:$0xff] }
 0x19a   :  { %2905 = vmatpush.bf16.msrb.mxu2 %v4709_v58 }
 0x19b   :  { %2599 = vmatmul.bf16.vlgmr.msra.gmra.mxu0 %v6740_v63 }
 0x19c   :  { %2911 = vmatpush.bf16.msrb.mxu0 %v4724_v59 }
 0x1a5   :  { %v2522_v63 = vpop.f32.mrf.mxu1 }
 0x1ad   :  { %v2524_v24 = vpop.f32.mrf.mxu1 }
 0x1ae   :  { %v2509_v20 = vpop.f32.mrf.mxu3 }
 0x1af   :  { %v2510_v9 = vadd.f32 %v2509_v20, %v1750_v17 }
 0x1b1   :  { %v6889_v22 = vadd.f32 %v2522_v63, %v2510_v9 }
 0x1b6   :  { %v2511_v3 = vpop.f32.mrf.mxu3 }
 0x1ba   :  { %v2431_v33 = vpop.f32.mrf.mxu2 }
 0x1bb   :  { %v2432_v52 = vadd.f32 %v2431_v33, %v6861_v62  ;;  %v4723_v62 = vld [vmem:[%s6996_s5 + $0xf0] sm:$0xff] }
 0x1bc   :  { %2912 = vmatpush.bf16.msrb.mxu0 %v4723_v62 }
 0x1c0   :  { %2913 = vmatpush.bf16.msrb.mxu0 %v4722_v2 }
 0x1c2   :  { %v2433_v44 = vpop.f32.mrf.mxu2 }
 0x1c4   :  { %2914 = vmatpush.bf16.msrb.mxu0 %v4721_v41 }
 0x1c5   :  { %v2574_v43 = vpop.f32.mrf.mxu1 }
 0x1c8   :  { %2915 = vmatpush.bf16.msrb.mxu0 %v4720_v11 }
 0x1ca   :  { %v2483_v29 = vpop.f32.mrf.mxu2 }
 0x1cb   :  { %v2484_v5 = vadd.f32 %v2483_v29, %v6876_v14  ;;  %v4718_v14 = vld [vmem:[%s6996_s5 + $0xc8] sm:$0xff] }
 0x1cc   :  { %2916 = vmatpush.bf16.msrb.mxu0 %v4719_v48 }
 0x1cd   :  { %v2576_v49 = vpop.f32.mrf.mxu1 }
 0x1ce   :  { %v2561_v37 = vpop.f32.mrf.mxu3 }
 0x1cf   :  { %v2562_v38 = vadd.f32 %v2561_v37, %v1751_v27  ;;  %v4726_v27 = vld [vmem:[%s6997_s6] ss:$0 sm:$0xff] }
 0x1d0   :  { %2917 = vmatpush.bf16.msrb.mxu0 %v4718_v14 }
 0x1d1   :  { %v6931_v53 = vadd.f32 %v2574_v43, %v2562_v38 }
 0x1d2   :  { %v2485_v51 = vpop.f32.mrf.mxu2 }
 0x1d4   :  { %2918 = vmatpush.bf16.msrb.mxu0 %v4717_v16 }
 0x1d6   :  { %v2563_v60 = vpop.f32.mrf.mxu3 }
 0x1d8   :  { %v2444_v54 = vpop.f32.mrf.mxu0 }
 0x1d9   :  { %v2445_v55 = vadd.f32 %v2444_v54, %v2432_v52 }
 0x1db   :  { %v2604_v56 = vmax.f32 %v2445_v55, 0.0 }
 0x1dd   :  { %v2608_v61 = vpack.c.bf16 %v2604_v56, %v2604_v56 }
 0x1df   :  { %2880 = vmatmul.bf16.vlgmr.msrb.gmra.mxu3 %v2608_v61 }
 0x1e0   :  { %v2535_v35 = vpop.f32.mrf.mxu2  ;;  %v2446_v0 = vpop.f32.mrf.mxu0 }
 0x1e1   :  { %v2536_v15 = vadd.f32 %v2535_v35, %v6889_v22 }
 0x1e8   :  { %v2537_v4 = vpop.f32.mrf.mxu2  ;;  %v2496_v7 = vpop.f32.mrf.mxu0 }
 0x1e9   :  { %v2497_v8 = vadd.f32 %v2496_v7, %v2484_v5 }
 0x1eb   :  { %v2605_v12 = vmax.f32 %v2497_v8, 0.0 }
 0x1ed   :  { %v2609_v13 = vpack.c.bf16 %v2605_v12, %v2605_v12 }
 0x1ef   :  { %2893 = vmatmul.bf16.vlgmr.msrb.gmra.mxu1 %v2609_v13 }
 0x1f0   :  { %v2498_v1 = vpop.f32.mrf.mxu0 }
 0x1f8   :  { %v2548_v17 = vpop.f32.mrf.mxu0 }
 0x1f9   :  { %v2549_v18 = vadd.f32 %v2548_v17, %v2536_v15 }
 0x1fb   :  { %v2606_v9 = vmax.f32 %v2549_v18, 0.0 }
 0x1fd   :  { %v2610_v21 = vpack.c.bf16 %v2606_v9, %v2606_v9 }
 0x1ff   :  { %2906 = vmatmul.bf16.vlgmr.msrb.gmra.mxu2 %v2610_v21 }
 0x200   :  { %v2587_v20 = vpop.f32.mrf.mxu2  ;;  %v2550_v63 = vpop.f32.mrf.mxu0 }
 0x201   :  { %v2588_v3 = vadd.f32 %v2587_v20, %v6931_v53 }
 0x208   :  { %v2589_v40 = vpop.f32.mrf.mxu2 }
 0x218   :  { %v2600_v46 = vpop.f32.mrf.mxu0 }
 0x219   :  { %v2601_v23 = vadd.f32 %v2600_v46, %v2588_v3 }
 0x21b   :  { %v2607_v24 = vmax.f32 %v2601_v23, 0.0 }
 0x21d   :  { %v2611_v25 = vpack.c.bf16 %v2607_v24, %v2607_v24 }
 0x21f   :  { %2919 = vmatmul.bf16.vlgmr.msrb.gmra.mxu0 %v2611_v25 }
 0x220   :  { %v2602_v22 = vpop.f32.mrf.mxu0 }
 0x262   :  { %v2881_v6 = vpop.f32.mrf.mxu3 }
 0x263   :  { %v2882_v36 = vadd.f32 %v4726_v27, %v2881_v6 }
 0x26a   :  { %v2883_v26 = vpop.f32.mrf.mxu3 }
 0x26c   :  { %v2894_v28 = vpop.f32.mrf.mxu1 }
 0x26d   :  { %v2895_v57 = vadd.f32 %v2894_v28, %v2882_v36 }
 0x274   :  { %v2896_v31 = vpop.f32.mrf.mxu1 }
 0x282   :  { %v2907_v32 = vpop.f32.mrf.mxu2 }
 0x283   :  { %v2908_v37 = vadd.f32 %v2907_v32, %v2895_v57 }
 0x28a   :  { %v2909_v33 = vpop.f32.mrf.mxu2 }
 0x29c   :  { %v2920_v38 = vpop.f32.mrf.mxu0 }
 0x29d   :  { %v2921_v42 = vadd.f32 %v2920_v38, %v2908_v37 }
 0x29f   :  { %2924 = vst [vmem:[#allocation2] sm:$0xff] %v2921_v42 }
 0x2a0   :  { %2935 = dma.vmem_to_hbm [thread:$0]  %s2931_s14, 128, %s2933_s17, [#allocation3]  }
 0x2a4   :  { %v2922_v30 = vpop.f32.mrf.mxu0 }
 0x2a5   :  { %4751 = dma.done.wait [#allocation3], 128  }
 0x2a6   :  { %4752 = vsyncadd [#allocation3], 4294967168 }
 0x2a7   :  { %2940 = vsyncpa [#allocation3], 1 }

</bundles_post_ra>
